<compile_context>
chip_gen: v5e
topology: v5e:2x2
jax: 0.10.0
libtpu: 0.0.40
codegen_flags: <defaults>
</compile_context>

<pallas_src>
import functools
import math

import jax
import jax.numpy as jnp
from jax.experimental import pallas as pl
from jax.experimental.pallas import tpu as pltpu

D_HEAD = 64        # fixed in the PyTorch module (d_k = d_v = d_q = 64)
D_FFN = 2048       # fixed in FeedForwardNet
LN_EPS = 1e-5      # nn.LayerNorm default
MASK_VAL = -10000000.0


# ----------------------------------------------------------------------------
# Fused per-layer kernel: QKV -> block-causal flash MHA -> out-proj -> +res ->
#                         LN -> FFN (Linear/ReLU/Linear) -> +res -> LN
# Grid: (batch_blocks, num_layers); layer axis is sequential (carry in scratch).
# ----------------------------------------------------------------------------
def _decoder_kernel(x_hbm, wqkv_ref, wo_ref, w1_ref, w2_ref, ln_ref,
                    o_ref, x_carry, attn_buf, dma_sem,
                    *, num_heads, q_block):
    b = pl.program_id(0)
    l = pl.program_id(1)
    BB, S, D = x_carry.shape
    M = BB * S
    H64 = num_heads * D_HEAD
    n_q = S // q_block

    # ---- first layer: DMA this batch block's input straight into the carry ----
    @pl.when(l == 0)
    def _():
        cp = pltpu.make_async_copy(x_hbm.at[pl.ds(b * BB, BB)], x_carry,
                                   dma_sem.at[0])
        cp.start()
        cp.wait()

    x2 = x_carry[...].reshape(M, D)                     # (M, D) fp32
    x_bf = x2.astype(jnp.bfloat16)

    # ---- fused QKV projection (single MXU push, N = 3*H*64) ----
    # 1/sqrt(d_head) is already folded into the Q columns of wqkv.
    qkv = jnp.dot(x_bf, wqkv_ref[0],
                  preferred_element_type=jnp.float32)   # (M, 3*H64) fp32

    q = qkv[:, 0:H64].astype(jnp.bfloat16).reshape(BB, S, H64)
    k = qkv[:, H64:2 * H64].astype(jnp.bfloat16).reshape(BB, S, H64)
    v = qkv[:, 2 * H64:3 * H64].astype(jnp.bfloat16).reshape(BB, S, H64)

    # ---- block-causal flash attention -------------------------------------
    # Static q/kv tiles; kv blocks strictly above the diagonal are skipped at
    # trace time; online softmax across kv blocks within a q block.
    for qb in range(n_q):
        q0 = qb * q_block
        q_blk = q[:, q0:q0 + q_block, :]                # (BB, tq, H64) bf16

        # Strict-upper-triangle mask: only the diagonal block needs it and it
        # is computed once per q block (shared by all heads).
        r = jax.lax.broadcasted_iota(jnp.int32, (q_block, q_block), 0)
        c = jax.lax.broadcasted_iota(jnp.int32, (q_block, q_block), 1)
        diag_mask = (c > r)[None, :, :]                 # (1, tq, tq)

        head_outs = []
        for h in range(num_heads):                      # num_heads is small here
            hs = slice(h * D_HEAD, (h + 1) * D_HEAD)
            qh = q_blk[..., hs]                         # (BB, tq, 64)
            m = l_sum = acc = None
            for kb in range(qb + 1):                    # causal block skipping
                k0 = kb * q_block
                kh = k[:, k0:k0 + q_block, hs]          # (BB, tk, 64)
                vh = v[:, k0:k0 + q_block, hs]
                s = jnp.einsum('bqd,bkd->bqk', qh, kh,
                               preferred_element_type=jnp.float32)  # fp32
                if kb == qb:                            # diagonal block only
                    s = jnp.where(diag_mask, jnp.float32(MASK_VAL), s)
                if kb == 0:
                    m = jnp.max(s, axis=-1, keepdims=True)
                    p = jnp.exp(s - m)
                    l_sum = jnp.sum(p, axis=-1, keepdims=True)
                    acc = jnp.einsum('bqk,bkd->bqd', p.astype(jnp.bfloat16), vh,
                                     preferred_element_type=jnp.float32)
                else:
                    m_new = jnp.maximum(m, jnp.max(s, axis=-1, keepdims=True))
                    alpha = jnp.exp(m - m_new)
                    p = jnp.exp(s - m_new)
                    l_sum = alpha * l_sum + jnp.sum(p, axis=-1, keepdims=True)
                    acc = alpha * acc + jnp.einsum(
                        'bqk,bkd->bqd', p.astype(jnp.bfloat16), vh,
                        preferred_element_type=jnp.float32)
                    m = m_new
            inv_l = pl.reciprocal(l_sum, approx=True)   # EUP slot, ~free
            head_outs.append((acc * inv_l).astype(jnp.bfloat16))

        # One lane-dense bf16 store per q block (128-lane multiple when
        # num_heads is even; odd head counts still work, just less efficiently).
        attn_buf[:, q0:q0 + q_block, :] = jnp.concatenate(head_outs, axis=-1)

    # ---- output projection + residual + LayerNorm ----
    attn = jnp.dot(attn_buf[...].reshape(M, H64), wo_ref[0],
                   preferred_element_type=jnp.float32)  # (M, D) fp32
    y = attn + x2

    ln = ln_ref[0]                                      # (4, D): g1, b1, g2, b2
    mean = jnp.mean(y, axis=-1, keepdims=True)
    var = jnp.mean((y - mean) ** 2, axis=-1, keepdims=True)
    x_ln = (y - mean) * jax.lax.rsqrt(var + LN_EPS) * ln[0:1, :] + ln[1:2, :]

    # ---- feed-forward + residual + LayerNorm ----
    h1 = jnp.maximum(
        jnp.dot(x_ln.astype(jnp.bfloat16), w1_ref[0],
                preferred_element_type=jnp.float32), 0.0)          # (M, D_FFN)
    y2 = jnp.dot(h1.astype(jnp.bfloat16), w2_ref[0],
                 preferred_element_type=jnp.float32) + x_ln        # (M, D)

    mean2 = jnp.mean(y2, axis=-1, keepdims=True)
    var2 = jnp.mean((y2 - mean2) ** 2, axis=-1, keepdims=True)
    out = (y2 - mean2) * jax.lax.rsqrt(var2 + LN_EPS) * ln[2:3, :] + ln[3:4, :]

    # Carry to the next layer.
    x_carry[...] = out.reshape(BB, S, D)

    # Only the last layer's activations are consumed by the HBM writeback.
    @pl.when(l == pl.num_programs(1) - 1)
    def _():
        o_ref[...] = out.reshape(BB, S, D)


# ----------------------------------------------------------------------------
# Wrapper
# ----------------------------------------------------------------------------
def decoder_forward(x, params, *, num_heads, batch_block=None, q_block=None,
                    vmem_limit_bytes=64 * 1024 * 1024):
    B, S, D = x.shape
    L = params["wqkv"].shape[0]
    H64 = num_heads * D_HEAD

    if batch_block is None:
        # v7x has 2 TensorCores: split the batch onto the "parallel" axis only
        # when each block still feeds the MXU >= ~256 rows; otherwise keep one
        # block so per-layer weights are streamed exactly once (v5e/v6e).
        batch_block = B // 2 if (B % 2 == 0 and (B // 2) * S >= 256) else B
    assert B % batch_block == 0
    nb = B // batch_block

    if q_block is None:
        q_block = min(S, 256)
    assert S % q_block == 0, "S must be a multiple of the attention q_block"

    kernel = functools.partial(_decoder_kernel, num_heads=num_heads,
                               q_block=q_block)
    return pl.pallas_call(
        kernel,
        out_shape=jax.ShapeDtypeStruct((B, S, D), jnp.float32),
        grid=(nb, L),
        in_specs=[
            # x stays in HBM; it is DMA'd into the activation carry at l == 0.
            pl.BlockSpec(memory_space=pl.ANY),
            pl.BlockSpec((1, D, 3 * H64), lambda b, l: (l, 0, 0)),
            pl.BlockSpec((1, H64, D),     lambda b, l: (l, 0, 0)),
            pl.BlockSpec((1, D, D_FFN),   lambda b, l: (l, 0, 0)),
            pl.BlockSpec((1, D_FFN, D),   lambda b, l: (l, 0, 0)),
            pl.BlockSpec((1, 4, D),       lambda b, l: (l, 0, 0)),
        ],
        out_specs=pl.BlockSpec((batch_block, S, D), lambda b, l: (b, 0, 0)),
        scratch_shapes=[
            pltpu.VMEM((batch_block, S, D), jnp.float32),      # activation carry
            pltpu.VMEM((batch_block, S, H64), jnp.bfloat16),   # attn head staging
            pltpu.SemaphoreType.DMA((1,)),                     # x -> carry DMA
        ],
        compiler_params=pltpu.CompilerParams(
            dimension_semantics=("parallel", "arbitrary"),
            vmem_limit_bytes=vmem_limit_bytes,
        ),
    )(x, params["wqkv"], params["wo"], params["w1"], params["w2"], params["ln"])


# ----------------------------------------------------------------------------
# Parameter init (deterministic; mimics nn.Linear uniform(-1/sqrt(fan_in), .)).
# Matmul weights stored in bf16 (fp32 accumulation in-kernel); LN params fp32.
# The attention scale 1/sqrt(64) = 0.125 (exact power of two) is folded into
# the Q columns of the fused QKV weight.
# ----------------------------------------------------------------------------
def init_decoder_params(key, num_layers, num_heads, d_model):
    h64 = num_heads * D_HEAD
    kq, kk, kv, ko, k1, k2 = jax.random.split(key, 6)

    def uni(k, shape, fan_in):
        bound = 1.0 / math.sqrt(fan_in)
        return jax.random.uniform(k, shape, jnp.float32, -bound, bound)

    scale = 1.0 / math.sqrt(float(D_HEAD))     # 0.125, exact in bf16/fp32
    wq = uni(kq, (num_layers, d_model, h64), d_model) * scale
    wk = uni(kk, (num_layers, d_model, h64), d_model)
    wv = uni(kv, (num_layers, d_model, h64), d_model)
    wqkv = jnp.concatenate([wq, wk, wv], axis=-1)

    ln = jnp.tile(jnp.array([1.0, 0.0, 1.0, 0.0], jnp.float32)[None, :, None],
                  (num_layers, 1, d_model))
    return {
        "wqkv": wqkv.astype(jnp.bfloat16),
        "wo":   uni(ko, (num_layers, h64, d_model), h64).astype(jnp.bfloat16),
        "w1":   uni(k1, (num_layers, d_model, D_FFN), d_model).astype(jnp.bfloat16),
        "w2":   uni(k2, (num_layers, D_FFN, d_model), D_FFN).astype(jnp.bfloat16),
        "ln":   ln,
    }


# ----------------------------------------------------------------------------
# Pure-JAX references
#   _ref_bf16: mirrors the kernel's mixed precision (bf16 dots, fp32 accumulate,
#              plain softmax -- mathematically equal to the online softmax)
#   _ref_fp32: PyTorch-faithful fp32 math (loose check); un-folds the q scale.
# ----------------------------------------------------------------------------
def _ref_bf16(x, params, *, num_heads):
    L = params["wqkv"].shape[0]
    H64 = num_heads * D_HEAD
    for l in range(L):
        wqkv, wo = params["wqkv"][l], params["wo"][l]
        w1, w2, ln = params["w1"][l], params["w2"][l], params["ln"][l]
        B, S, D = x.shape
        x2 = x.reshape(B * S, D)
        qkv = jnp.dot(x2.astype(jnp.bfloat16), wqkv, preferred_element_type=jnp.float32)
        q = qkv[:, :H64].astype(jnp.bfloat16).reshape(B, S, H64)   # scale in wqkv
        k = qkv[:, H64:2 * H64].astype(jnp.bfloat16).reshape(B, S, H64)
        v = qkv[:, 2 * H64:].astype(jnp.bfloat16).reshape(B, S, H64)
        mask = jnp.triu(jnp.ones((S, S), bool), k=1)[None]
        outs = []
        for h in range(num_heads):
            sl = slice(h * D_HEAD, (h + 1) * D_HEAD)
            s = jnp.einsum('bqd,bkd->bqk', q[..., sl], k[..., sl],
                           preferred_element_type=jnp.float32)
            s = jnp.where(mask, MASK_VAL, s)
            s = s - s.max(-1, keepdims=True)
            p = jnp.exp(s)
            p = p / p.sum(-1, keepdims=True)
            o_h = jnp.einsum('bqk,bkd->bqd', p.astype(jnp.bfloat16), v[..., sl],
                             preferred_element_type=jnp.float32)
            outs.append(o_h.astype(jnp.bfloat16))
        attn = jnp.concatenate(outs, -1).reshape(B * S, H64)
        y = jnp.dot(attn, wo, preferred_element_type=jnp.float32) + x2
        mu = y.mean(-1, keepdims=True)
        var = ((y - mu) ** 2).mean(-1, keepdims=True)
        x_ln = (y - mu) * jax.lax.rsqrt(var + LN_EPS) * ln[0:1] + ln[1:2]
        h1 = jnp.maximum(jnp.dot(x_ln.astype(jnp.bfloat16), w1,
                                 preferred_element_type=jnp.float32), 0.0)
        y2 = jnp.dot(h1.astype(jnp.bfloat16), w2,
                     preferred_element_type=jnp.float32) + x_ln
        mu = y2.mean(-1, keepdims=True)
        var = ((y2 - mu) ** 2).mean(-1, keepdims=True)
        x = ((y2 - mu) * jax.lax.rsqrt(var + LN_EPS) * ln[2:3] + ln[3:4]).reshape(B, S, D)
    return x


def _ref_fp32(x, params, *, num_heads):
    L = params["wqkv"].shape[0]
    H64 = num_heads * D_HEAD
    for l in range(L):
        wqkv = params["wqkv"][l].astype(jnp.float32)
        wq = wqkv[:, :H64] * math.sqrt(float(D_HEAD))   # un-fold the 1/sqrt(d_k)
        wk = wqkv[:, H64:2 * H64]
        wv = wqkv[:, 2 * H64:]
        wo = params["wo"][l].astype(jnp.float32)
        w1 = params["w1"][l].astype(jnp.float32)
        w2 = params["w2"][l].astype(jnp.float32)
        ln = params["ln"][l]
        B, S, D = x.shape
        res = x
        Q = (x @ wq).reshape(B, S, num_heads, D_HEAD).transpose(0, 2, 1, 3)
        K = (x @ wk).reshape(B, S, num_heads, D_HEAD).transpose(0, 2, 1, 3)
        V = (x @ wv).reshape(B, S, num_heads, D_HEAD).transpose(0, 2, 1, 3)
        s = jnp.einsum("bhsd,bhtd->bhst", Q, K) / math.sqrt(D_HEAD)
        mask = jnp.triu(jnp.ones((S, S), bool), k=1)
        s = jnp.where(mask, MASK_VAL, s)
        p = jax.nn.softmax(s, axis=-1)
        o = jnp.einsum("bhst,bhtd->bhsd", p, V).transpose(0, 2, 1, 3).reshape(B, S, H64)
        y = o @ wo + res
        mu = y.mean(-1, keepdims=True)
        var = ((y - mu) ** 2).mean(-1, keepdims=True)
        x = (y - mu) / jnp.sqrt(var + LN_EPS) * ln[0] + ln[1]
        res = x
        hdn = jnp.maximum(x @ w1, 0.0)
        y = hdn @ w2 + res
        mu = y.mean(-1, keepdims=True)
        var = ((y - mu) ** 2).mean(-1, keepdims=True)
        x = (y - mu) / jnp.sqrt(var + LN_EPS) * ln[2] + ln[3]
    return x


if __name__ == "__main__":
    num_heads = 2
    d_model = num_heads * D_HEAD          # 128
    num_layers = 2
    batch, seq = 2, 8

    key = jax.random.PRNGKey(0)
    kx, kp = jax.random.split(key)
    x = jax.random.normal(kx, (batch, seq, d_model), jnp.float32)
    params = init_decoder_params(kp, num_layers, num_heads, d_model)

    out = decoder_forward(x, params, num_heads=num_heads)
    out = jax.block_until_ready(out)

    ref_mixed = _ref_bf16(x, params, num_heads=num_heads)
    ref_full = _ref_fp32(x, params, num_heads=num_heads)

    assert out.shape == (batch, seq, d_model)
    # Slightly loose tolerance vs the mixed-precision ref: the kernel uses the
    # approximate (EUP) reciprocal for the softmax denominator.
    assert jnp.allclose(out, ref_mixed, atol=2e-2, rtol=2e-2), \
        float(jnp.max(jnp.abs(out - ref_mixed)))
    assert jnp.allclose(out, ref_full, atol=1e-1, rtol=1e-1), \
        float(jnp.max(jnp.abs(out - ref_full)))

    print("KERNEL_OK")
</pallas_src>

<mosaic_0001>
module attributes {stable_mosaic.version = 11 : i64} {
  func.func @_decoder_kernel(%arg0: i32, %arg1: i32, %arg2: memref<2x8x128xf32, #tpu.memory_space<any>>, %arg3: memref<1x128x384xbf16, #tpu.memory_space<vmem>>, %arg4: memref<1x128x128xbf16, #tpu.memory_space<vmem>>, %arg5: memref<1x128x2048xbf16, #tpu.memory_space<vmem>>, %arg6: memref<1x2048x128xbf16, #tpu.memory_space<vmem>>, %arg7: memref<1x4x128xf32, #tpu.memory_space<vmem>>, %arg8: memref<2x8x128xf32, #tpu.memory_space<vmem>>, %arg9: memref<2x8x128xf32, #tpu.memory_space<vmem>>, %arg10: memref<2x8x128xbf16, #tpu.memory_space<vmem>>, %arg11: memref<1x!tpu.dma_semaphore, #tpu.memory_space<semaphore_mem>>) attributes {dimension_semantics = [#tpu.dimension_semantics<parallel>, #tpu.dimension_semantics<arbitrary>], iteration_bounds = array<i64: 1, 2>, scalar_prefetch = 0 : i64, scratch_operands = 3 : i64, tpu.core_type = #tpu.core_type<tc>, window_params = [{}, {transform_indices = @transform_1, window_bounds = array<i64: 1, 128, 384>}, {transform_indices = @transform_2, window_bounds = array<i64: 1, 128, 128>}, {transform_indices = @transform_3, window_bounds = array<i64: 1, 128, 2048>}, {transform_indices = @transform_4, window_bounds = array<i64: 1, 2048, 128>}, {transform_indices = @transform_5, window_bounds = array<i64: 1, 4, 128>}, {transform_indices = @transform_6, window_bounds = array<i64: 2, 8, 128>}]} {
    %c0_i32 = arith.constant 0 : i32
    %0 = arith.cmpi eq, %arg1, %c0_i32 : i32
    %1 = arith.extui %0 : i1 to i32
    %c0_i32_0 = arith.constant 0 : i32
    %2 = arith.cmpi ne, %1, %c0_i32_0 : i32
    scf.if %2 {
      %c2_i32 = arith.constant 2 : i32
      %138 = arith.muli %arg0, %c2_i32 : i32
      %c0_i32_52 = arith.constant 0 : i32
      %c0_i32_53 = arith.constant 0 : i32
      %c0_i32_54 = arith.constant 0 : i32
      %139 = tpu.memref_slice %arg2[%138, %c0_i32_53, %c0_i32_54] : memref<2x8x128xf32, #tpu.memory_space<any>> -> memref<2x8x128xf32, #tpu.memory_space<any>>
      %140 = tpu.memref_slice %arg11[%c0_i32_52] : memref<1x!tpu.dma_semaphore, #tpu.memory_space<semaphore_mem>> -> memref<1x!tpu.dma_semaphore, #tpu.memory_space<semaphore_mem>>
      %141 = tpu.memref_squeeze %140 : memref<1x!tpu.dma_semaphore, #tpu.memory_space<semaphore_mem>> -> memref<!tpu.dma_semaphore, #tpu.memory_space<semaphore_mem>>
      tpu.enqueue_dma source(%139 : memref<2x8x128xf32, #tpu.memory_space<any>>) target(%arg9 : memref<2x8x128xf32, #tpu.memory_space<vmem>>) target_semaphore(%141 : memref<!tpu.dma_semaphore, #tpu.memory_space<semaphore_mem>>)
      %c0_i32_55 = arith.constant 0 : i32
      %c0_i32_56 = arith.constant 0 : i32
      %c0_i32_57 = arith.constant 0 : i32
      %142 = tpu.memref_slice %arg2[%138, %c0_i32_56, %c0_i32_57] : memref<2x8x128xf32, #tpu.memory_space<any>> -> memref<2x8x128xf32, #tpu.memory_space<any>>
      %143 = tpu.memref_slice %arg11[%c0_i32_55] : memref<1x!tpu.dma_semaphore, #tpu.memory_space<semaphore_mem>> -> memref<1x!tpu.dma_semaphore, #tpu.memory_space<semaphore_mem>>
      %144 = tpu.memref_squeeze %143 : memref<1x!tpu.dma_semaphore, #tpu.memory_space<semaphore_mem>> -> memref<!tpu.dma_semaphore, #tpu.memory_space<semaphore_mem>>
      tpu.wait_dma2 semaphore(%144 : memref<!tpu.dma_semaphore, #tpu.memory_space<semaphore_mem>>) src(%142 : memref<2x8x128xf32, #tpu.memory_space<any>>) dst(%arg9 : memref<2x8x128xf32, #tpu.memory_space<vmem>>)
    } else {
    }
    %c0 = arith.constant 0 : index
    %c0_1 = arith.constant 0 : index
    %c0_2 = arith.constant 0 : index
    %3 = vector.load %arg9[%c0, %c0_1, %c0_2] : memref<2x8x128xf32, #tpu.memory_space<vmem>>, vector<2x8x128xf32>
    %4 = vector.shape_cast %3 : vector<2x8x128xf32> to vector<16x128xf32>
    %5 = arith.truncf %4 : vector<16x128xf32> to vector<16x128xbf16>
    %c0_3 = arith.constant 0 : index
    %c0_4 = arith.constant 0 : index
    %c0_5 = arith.constant 0 : index
    %6 = vector.load %arg3[%c0_3, %c0_4, %c0_5] : memref<1x128x384xbf16, #tpu.memory_space<vmem>>, vector<1x128x384xbf16>
    %7 = vector.shape_cast %6 : vector<1x128x384xbf16> to vector<128x384xbf16>
    %cst = arith.constant dense<0.000000e+00> : vector<16x384xf32>
    %8 = tpu.matmul %5, %7, %cst {dimension_numbers = #tpu.dot_dimension_numbers<[1], [0], [0], [1], [0, 0, 1, 1], [], []>} : vector<16x128xbf16>, vector<128x384xbf16>, vector<16x384xf32> -> vector<16x384xf32>
    %9 = vector.extract_strided_slice %8 {offsets = [0, 0], sizes = [16, 128], strides = [1, 1]} : vector<16x384xf32> to vector<16x128xf32>
    %10 = arith.truncf %9 : vector<16x128xf32> to vector<16x128xbf16>
    %11 = vector.shape_cast %10 : vector<16x128xbf16> to vector<2x8x128xbf16>
    %12 = vector.extract_strided_slice %8 {offsets = [0, 128], sizes = [16, 128], strides = [1, 1]} : vector<16x384xf32> to vector<16x128xf32>
    %13 = arith.truncf %12 : vector<16x128xf32> to vector<16x128xbf16>
    %14 = vector.shape_cast %13 : vector<16x128xbf16> to vector<2x8x128xbf16>
    %15 = vector.extract_strided_slice %8 {offsets = [0, 256], sizes = [16, 128], strides = [1, 1]} : vector<16x384xf32> to vector<16x128xf32>
    %16 = arith.truncf %15 : vector<16x128xf32> to vector<16x128xbf16>
    %17 = vector.shape_cast %16 : vector<16x128xbf16> to vector<2x8x128xbf16>
    %18 = tpu.iota {dimensions = array<i32: 0>} : vector<8x8xi32>
    %19 = tpu.iota {dimensions = array<i32: 1>} : vector<8x8xi32>
    %20 = arith.cmpi sgt, %19, %18 : vector<8x8xi32>
    %21 = vector.shape_cast %20 : vector<8x8xi1> to vector<1x8x8xi1>
    %22 = vector.extract_strided_slice %11 {offsets = [0, 0, 0], sizes = [2, 8, 64], strides = [1, 1, 1]} : vector<2x8x128xbf16> to vector<2x8x64xbf16>
    %23 = vector.extract_strided_slice %14 {offsets = [0, 0, 0], sizes = [2, 8, 64], strides = [1, 1, 1]} : vector<2x8x128xbf16> to vector<2x8x64xbf16>
    %24 = vector.extract_strided_slice %17 {offsets = [0, 0, 0], sizes = [2, 8, 64], strides = [1, 1, 1]} : vector<2x8x128xbf16> to vector<2x8x64xbf16>
    "tpu.trace_start"() <{level = 10 : i32, message = "bqd,bkd->bqk"}> : () -> ()
    %cst_6 = arith.constant dense<0.000000e+00> : vector<2x8x8xf32>
    %25 = tpu.matmul %22, %23, %cst_6 {dimension_numbers = #tpu.dot_dimension_numbers<[2], [2], [1], [1], [0, 0, 0, 1, 1, 1], [0], [0]>} : vector<2x8x64xbf16>, vector<2x8x64xbf16>, vector<2x8x8xf32> -> vector<2x8x8xf32>
    %cst_7 = arith.constant -1.000000e+07 : f32
    "tpu.trace_stop"() : () -> ()
    %26 = vector.shape_cast %21 : vector<1x8x8xi1> to vector<1x8x8xi1>
    %27 = vector.broadcast %26 : vector<1x8x8xi1> to vector<2x8x8xi1>
    %28 = vector.broadcast %cst_7 : f32 to vector<2x8x8xf32>
    %29 = arith.select %27, %28, %25 : vector<2x8x8xi1>, vector<2x8x8xf32>
    %cst_8 = arith.constant dense<0xFF800000> : vector<2x8xf32>
    %30 = vector.multi_reduction <maximumf>, %29, %cst_8 [2] : vector<2x8x8xf32> to vector<2x8xf32>
    %31 = vector.shape_cast %30 : vector<2x8xf32> to vector<2x8x1xf32>
    %32 = vector.broadcast %31 : vector<2x8x1xf32> to vector<2x8x8xf32>
    %33 = arith.subf %29, %32 : vector<2x8x8xf32>
    %34 = math.exp %33 : vector<2x8x8xf32>
    %cst_9 = arith.constant dense<0.000000e+00> : vector<2x8xf32>
    %35 = vector.multi_reduction <add>, %34, %cst_9 [2] : vector<2x8x8xf32> to vector<2x8xf32>
    %36 = vector.shape_cast %35 : vector<2x8xf32> to vector<2x8x1xf32>
    %37 = arith.truncf %34 : vector<2x8x8xf32> to vector<2x8x8xbf16>
    "tpu.trace_start"() <{level = 10 : i32, message = "bqk,bkd->bqd"}> : () -> ()
    %cst_10 = arith.constant dense<0.000000e+00> : vector<2x8x64xf32>
    %38 = tpu.matmul %37, %24, %cst_10 {dimension_numbers = #tpu.dot_dimension_numbers<[2], [1], [1], [2], [0, 0, 0, 1, 1, 2], [0], [0]>} : vector<2x8x8xbf16>, vector<2x8x64xbf16>, vector<2x8x64xf32> -> vector<2x8x64xf32>
    "tpu.trace_stop"() : () -> ()
    %39 = tpu.reciprocal %36 {approx = true} : vector<2x8x1xf32> -> vector<2x8x1xf32>
    %40 = vector.broadcast %39 : vector<2x8x1xf32> to vector<2x8x64xf32>
    %41 = arith.mulf %38, %40 : vector<2x8x64xf32>
    %42 = arith.truncf %41 : vector<2x8x64xf32> to vector<2x8x64xbf16>
    %43 = vector.extract_strided_slice %11 {offsets = [0, 0, 64], sizes = [2, 8, 64], strides = [1, 1, 1]} : vector<2x8x128xbf16> to vector<2x8x64xbf16>
    %44 = vector.extract_strided_slice %14 {offsets = [0, 0, 64], sizes = [2, 8, 64], strides = [1, 1, 1]} : vector<2x8x128xbf16> to vector<2x8x64xbf16>
    %45 = vector.extract_strided_slice %17 {offsets = [0, 0, 64], sizes = [2, 8, 64], strides = [1, 1, 1]} : vector<2x8x128xbf16> to vector<2x8x64xbf16>
    "tpu.trace_start"() <{level = 10 : i32, message = "bqd,bkd->bqk"}> : () -> ()
    %cst_11 = arith.constant dense<0.000000e+00> : vector<2x8x8xf32>
    %46 = tpu.matmul %43, %44, %cst_11 {dimension_numbers = #tpu.dot_dimension_numbers<[2], [2], [1], [1], [0, 0, 0, 1, 1, 1], [0], [0]>} : vector<2x8x64xbf16>, vector<2x8x64xbf16>, vector<2x8x8xf32> -> vector<2x8x8xf32>
    %cst_12 = arith.constant -1.000000e+07 : f32
    "tpu.trace_stop"() : () -> ()
    %47 = vector.shape_cast %21 : vector<1x8x8xi1> to vector<1x8x8xi1>
    %48 = vector.broadcast %47 : vector<1x8x8xi1> to vector<2x8x8xi1>
    %49 = vector.broadcast %cst_12 : f32 to vector<2x8x8xf32>
    %50 = arith.select %48, %49, %46 : vector<2x8x8xi1>, vector<2x8x8xf32>
    %cst_13 = arith.constant dense<0xFF800000> : vector<2x8xf32>
    %51 = vector.multi_reduction <maximumf>, %50, %cst_13 [2] : vector<2x8x8xf32> to vector<2x8xf32>
    %52 = vector.shape_cast %51 : vector<2x8xf32> to vector<2x8x1xf32>
    %53 = vector.broadcast %52 : vector<2x8x1xf32> to vector<2x8x8xf32>
    %54 = arith.subf %50, %53 : vector<2x8x8xf32>
    %55 = math.exp %54 : vector<2x8x8xf32>
    %cst_14 = arith.constant dense<0.000000e+00> : vector<2x8xf32>
    %56 = vector.multi_reduction <add>, %55, %cst_14 [2] : vector<2x8x8xf32> to vector<2x8xf32>
    %57 = vector.shape_cast %56 : vector<2x8xf32> to vector<2x8x1xf32>
    %58 = arith.truncf %55 : vector<2x8x8xf32> to vector<2x8x8xbf16>
    "tpu.trace_start"() <{level = 10 : i32, message = "bqk,bkd->bqd"}> : () -> ()
    %cst_15 = arith.constant dense<0.000000e+00> : vector<2x8x64xf32>
    %59 = tpu.matmul %58, %45, %cst_15 {dimension_numbers = #tpu.dot_dimension_numbers<[2], [1], [1], [2], [0, 0, 0, 1, 1, 2], [0], [0]>} : vector<2x8x8xbf16>, vector<2x8x64xbf16>, vector<2x8x64xf32> -> vector<2x8x64xf32>
    "tpu.trace_stop"() : () -> ()
    %60 = tpu.reciprocal %57 {approx = true} : vector<2x8x1xf32> -> vector<2x8x1xf32>
    %61 = vector.broadcast %60 : vector<2x8x1xf32> to vector<2x8x64xf32>
    %62 = arith.mulf %59, %61 : vector<2x8x64xf32>
    %63 = arith.truncf %62 : vector<2x8x64xf32> to vector<2x8x64xbf16>
    %64 = tpu.concatenate %42, %63 in 2 : vector<2x8x64xbf16>, vector<2x8x64xbf16> -> vector<2x8x128xbf16>
    %c0_16 = arith.constant 0 : index
    %c0_17 = arith.constant 0 : index
    %c0_18 = arith.constant 0 : index
    %65 = vector.load %arg10[%c0_16, %c0_17, %c0_18] : memref<2x8x128xbf16, #tpu.memory_space<vmem>>, vector<2x8x128xbf16>
    tpu.vector_store %arg10[%c0_16, %c0_17, %c0_18], %64 {strides = array<i32>} : memref<2x8x128xbf16, #tpu.memory_space<vmem>>, vector<2x8x128xbf16>,
    %c0_19 = arith.constant 0 : index
    %c0_20 = arith.constant 0 : index
    %c0_21 = arith.constant 0 : index
    %66 = vector.load %arg10[%c0_19, %c0_20, %c0_21] : memref<2x8x128xbf16, #tpu.memory_space<vmem>>, vector<2x8x128xbf16>
    %67 = vector.shape_cast %66 : vector<2x8x128xbf16> to vector<16x128xbf16>
    %c0_22 = arith.constant 0 : index
    %c0_23 = arith.constant 0 : index
    %c0_24 = arith.constant 0 : index
    %68 = vector.load %arg4[%c0_22, %c0_23, %c0_24] : memref<1x128x128xbf16, #tpu.memory_space<vmem>>, vector<1x128x128xbf16>
    %69 = vector.shape_cast %68 : vector<1x128x128xbf16> to vector<128x128xbf16>
    %cst_25 = arith.constant dense<0.000000e+00> : vector<16x128xf32>
    %70 = tpu.matmul %67, %69, %cst_25 {dimension_numbers = #tpu.dot_dimension_numbers<[1], [0], [0], [1], [0, 0, 1, 1], [], []>} : vector<16x128xbf16>, vector<128x128xbf16>, vector<16x128xf32> -> vector<16x128xf32>
    %71 = arith.addf %70, %4 : vector<16x128xf32>
    %c0_26 = arith.constant 0 : index
    %c0_27 = arith.constant 0 : index
    %c0_28 = arith.constant 0 : index
    %72 = vector.load %arg7[%c0_26, %c0_27, %c0_28] : memref<1x4x128xf32, #tpu.memory_space<vmem>>, vector<1x4x128xf32>
    %73 = vector.shape_cast %72 : vector<1x4x128xf32> to vector<4x128xf32>
    %cst_29 = arith.constant dense<0.000000e+00> : vector<16xf32>
    %74 = vector.multi_reduction <add>, %71, %cst_29 [1] : vector<16x128xf32> to vector<16xf32>
    %75 = vector.shape_cast %74 : vector<16xf32> to vector<16x1xf32>
    %cst_30 = arith.constant 1.280000e+02 : f32
    %76 = vector.broadcast %cst_30 : f32 to vector<16x1xf32>
    %77 = arith.divf %75, %76 : vector<16x1xf32>
    %78 = vector.broadcast %77 : vector<16x1xf32> to vector<16x128xf32>
    %79 = arith.subf %71, %78 : vector<16x128xf32>
    %80 = arith.mulf %79, %79 : vector<16x128xf32>
    %cst_31 = arith.constant dense<0.000000e+00> : vector<16xf32>
    %81 = vector.multi_reduction <add>, %80, %cst_31 [1] : vector<16x128xf32> to vector<16xf32>
    %82 = vector.shape_cast %81 : vector<16xf32> to vector<16x1xf32>
    %cst_32 = arith.constant 1.280000e+02 : f32
    %83 = vector.broadcast %cst_32 : f32 to vector<16x1xf32>
    %84 = arith.divf %82, %83 : vector<16x1xf32>
    %85 = vector.broadcast %77 : vector<16x1xf32> to vector<16x128xf32>
    %86 = arith.subf %71, %85 : vector<16x128xf32>
    %cst_33 = arith.constant 9.99999974E-6 : f32
    %87 = vector.broadcast %cst_33 : f32 to vector<16x1xf32>
    %88 = arith.addf %84, %87 : vector<16x1xf32>
    %89 = math.rsqrt %88 : vector<16x1xf32>
    %90 = vector.broadcast %89 : vector<16x1xf32> to vector<16x128xf32>
    %91 = arith.mulf %86, %90 : vector<16x128xf32>
    %92 = vector.extract_strided_slice %73 {offsets = [0, 0], sizes = [1, 128], strides = [1, 1]} : vector<4x128xf32> to vector<1x128xf32>
    %93 = vector.broadcast %92 : vector<1x128xf32> to vector<16x128xf32>
    %94 = arith.mulf %91, %93 : vector<16x128xf32>
    %95 = vector.extract_strided_slice %73 {offsets = [1, 0], sizes = [1, 128], strides = [1, 1]} : vector<4x128xf32> to vector<1x128xf32>
    %96 = vector.broadcast %95 : vector<1x128xf32> to vector<16x128xf32>
    %97 = arith.addf %94, %96 : vector<16x128xf32>
    %98 = arith.truncf %97 : vector<16x128xf32> to vector<16x128xbf16>
    %c0_34 = arith.constant 0 : index
    %c0_35 = arith.constant 0 : index
    %c0_36 = arith.constant 0 : index
    %99 = vector.load %arg5[%c0_34, %c0_35, %c0_36] : memref<1x128x2048xbf16, #tpu.memory_space<vmem>>, vector<1x128x2048xbf16>
    %100 = vector.shape_cast %99 : vector<1x128x2048xbf16> to vector<128x2048xbf16>
    %cst_37 = arith.constant dense<0.000000e+00> : vector<16x2048xf32>
    %101 = tpu.matmul %98, %100, %cst_37 {dimension_numbers = #tpu.dot_dimension_numbers<[1], [0], [0], [1], [0, 0, 1, 1], [], []>} : vector<16x128xbf16>, vector<128x2048xbf16>, vector<16x2048xf32> -> vector<16x2048xf32>
    %cst_38 = arith.constant 0.000000e+00 : f32
    %102 = vector.broadcast %cst_38 : f32 to vector<16x2048xf32>
    %103 = arith.maximumf %101, %102 : vector<16x2048xf32>
    %104 = arith.truncf %103 : vector<16x2048xf32> to vector<16x2048xbf16>
    %c0_39 = arith.constant 0 : index
    %c0_40 = arith.constant 0 : index
    %c0_41 = arith.constant 0 : index
    %105 = vector.load %arg6[%c0_39, %c0_40, %c0_41] : memref<1x2048x128xbf16, #tpu.memory_space<vmem>>, vector<1x2048x128xbf16>
    %106 = vector.shape_cast %105 : vector<1x2048x128xbf16> to vector<2048x128xbf16>
    %cst_42 = arith.constant dense<0.000000e+00> : vector<16x128xf32>
    %107 = tpu.matmul %104, %106, %cst_42 {dimension_numbers = #tpu.dot_dimension_numbers<[1], [0], [0], [1], [0, 0, 1, 1], [], []>} : vector<16x2048xbf16>, vector<2048x128xbf16>, vector<16x128xf32> -> vector<16x128xf32>
    %108 = arith.addf %107, %97 : vector<16x128xf32>
    %cst_43 = arith.constant dense<0.000000e+00> : vector<16xf32>
    %109 = vector.multi_reduction <add>, %108, %cst_43 [1] : vector<16x128xf32> to vector<16xf32>
    %110 = vector.shape_cast %109 : vector<16xf32> to vector<16x1xf32>
    %cst_44 = arith.constant 1.280000e+02 : f32
    %111 = vector.broadcast %cst_44 : f32 to vector<16x1xf32>
    %112 = arith.divf %110, %111 : vector<16x1xf32>
    %113 = vector.broadcast %112 : vector<16x1xf32> to vector<16x128xf32>
    %114 = arith.subf %108, %113 : vector<16x128xf32>
    %115 = arith.mulf %114, %114 : vector<16x128xf32>
    %cst_45 = arith.constant dense<0.000000e+00> : vector<16xf32>
    %116 = vector.multi_reduction <add>, %115, %cst_45 [1] : vector<16x128xf32> to vector<16xf32>
    %117 = vector.shape_cast %116 : vector<16xf32> to vector<16x1xf32>
    %cst_46 = arith.constant 1.280000e+02 : f32
    %118 = vector.broadcast %cst_46 : f32 to vector<16x1xf32>
    %119 = arith.divf %117, %118 : vector<16x1xf32>
    %120 = vector.broadcast %112 : vector<16x1xf32> to vector<16x128xf32>
    %121 = arith.subf %108, %120 : vector<16x128xf32>
    %cst_47 = arith.constant 9.99999974E-6 : f32
    %122 = vector.broadcast %cst_47 : f32 to vector<16x1xf32>
    %123 = arith.addf %119, %122 : vector<16x1xf32>
    %124 = math.rsqrt %123 : vector<16x1xf32>
    %125 = vector.broadcast %124 : vector<16x1xf32> to vector<16x128xf32>
    %126 = arith.mulf %121, %125 : vector<16x128xf32>
    %127 = vector.extract_strided_slice %73 {offsets = [2, 0], sizes = [1, 128], strides = [1, 1]} : vector<4x128xf32> to vector<1x128xf32>
    %128 = vector.broadcast %127 : vector<1x128xf32> to vector<16x128xf32>
    %129 = arith.mulf %126, %128 : vector<16x128xf32>
    %130 = vector.extract_strided_slice %73 {offsets = [3, 0], sizes = [1, 128], strides = [1, 1]} : vector<4x128xf32> to vector<1x128xf32>
    %131 = vector.broadcast %130 : vector<1x128xf32> to vector<16x128xf32>
    %132 = arith.addf %129, %131 : vector<16x128xf32>
    %133 = vector.shape_cast %132 : vector<16x128xf32> to vector<2x8x128xf32>
    %c0_48 = arith.constant 0 : index
    %c0_49 = arith.constant 0 : index
    %c0_50 = arith.constant 0 : index
    %134 = vector.load %arg9[%c0_48, %c0_49, %c0_50] : memref<2x8x128xf32, #tpu.memory_space<vmem>>, vector<2x8x128xf32>
    tpu.vector_store %arg9[%c0_48, %c0_49, %c0_50], %133 {strides = array<i32>} : memref<2x8x128xf32, #tpu.memory_space<vmem>>, vector<2x8x128xf32>,
    %c1_i32 = arith.constant 1 : i32
    %135 = arith.cmpi eq, %arg1, %c1_i32 : i32
    %136 = arith.extui %135 : i1 to i32
    %c0_i32_51 = arith.constant 0 : i32
    %137 = arith.cmpi ne, %136, %c0_i32_51 : i32
    scf.if %137 {
      %138 = vector.shape_cast %132 : vector<16x128xf32> to vector<2x8x128xf32>
      %c0_52 = arith.constant 0 : index
      %c0_53 = arith.constant 0 : index
      %c0_54 = arith.constant 0 : index
      %139 = vector.load %arg8[%c0_52, %c0_53, %c0_54] : memref<2x8x128xf32, #tpu.memory_space<vmem>>, vector<2x8x128xf32>
      tpu.vector_store %arg8[%c0_52, %c0_53, %c0_54], %138 {strides = array<i32>} : memref<2x8x128xf32, #tpu.memory_space<vmem>>, vector<2x8x128xf32>,
    } else {
    }
    return
  }
  func.func @transform_1(%arg0: i32, %arg1: i32) -> (i32, i32, i32) {
    %c0_i32 = arith.constant 0 : i32
    %c0_i32_0 = arith.constant 0 : i32
    %c0_i32_1 = arith.constant 0 : i32
    return %arg1, %c0_i32, %c0_i32_0 : i32, i32, i32
  }
  func.func @transform_2(%arg0: i32, %arg1: i32) -> (i32, i32, i32) {
    %c0_i32 = arith.constant 0 : i32
    %c0_i32_0 = arith.constant 0 : i32
    %c0_i32_1 = arith.constant 0 : i32
    return %arg1, %c0_i32, %c0_i32_0 : i32, i32, i32
  }
  func.func @transform_3(%arg0: i32, %arg1: i32) -> (i32, i32, i32) {
    %c0_i32 = arith.constant 0 : i32
    %c0_i32_0 = arith.constant 0 : i32
    %c0_i32_1 = arith.constant 0 : i32
    return %arg1, %c0_i32, %c0_i32_0 : i32, i32, i32
  }
  func.func @transform_4(%arg0: i32, %arg1: i32) -> (i32, i32, i32) {
    %c0_i32 = arith.constant 0 : i32
    %c0_i32_0 = arith.constant 0 : i32
    %c0_i32_1 = arith.constant 0 : i32
    return %arg1, %c0_i32, %c0_i32_0 : i32, i32, i32
  }
  func.func @transform_5(%arg0: i32, %arg1: i32) -> (i32, i32, i32) {
    %c0_i32 = arith.constant 0 : i32
    %c0_i32_0 = arith.constant 0 : i32
    %c0_i32_1 = arith.constant 0 : i32
    return %arg1, %c0_i32, %c0_i32_0 : i32, i32, i32
  }
  func.func @transform_6(%arg0: i32, %arg1: i32) -> (i32, i32, i32) {
    %c0_i32 = arith.constant 0 : i32
    %c0_i32_0 = arith.constant 0 : i32
    %c0_i32_1 = arith.constant 0 : i32
    return %arg0, %c0_i32, %c0_i32_0 : i32, i32, i32
  }
}

</mosaic_0001>

<bundles_post_ra>
// kernel: tpu_custom_call.1
= control target key start
LH: loop header
LB: loop body
LE: loop exit
PB: predicated region body
PF: predicated region fallthrough
CT: control target
= control target key end

     0   :  { %s6214_s0 = inlined_call_operand.hbm [shape: f32[2,8,128], index: 0, kind: input, shape index: {}]   ;;  %s6215_s1 = inlined_call_operand.hbm [shape: bf16[2,128,384], index: 1, kind: input, shape index: {}]   ;;  %s6216_s2 = inlined_call_operand.hbm [shape: bf16[2,128,128], index: 2, kind: input, shape index: {}]   ;;  %s6217_s3 = inlined_call_operand.hbm [shape: bf16[2,128,2048], index: 3, kind: input, shape index: {}]   ;;  %s6218_s4 = inlined_call_operand.hbm [shape: bf16[2,2048,128], index: 4, kind: input, shape index: {}]   ;;  %s6219_s5 = inlined_call_operand.hbm [shape: f32[2,4,128], index: 5, kind: input, shape index: {}]   ;;  %s6220_s6 = inlined_call_operand.hbm [shape: f32[2,8,128], index: 6, kind: output, shape index: {}]  }
   0x1   :  { %6227 = sst [smem:[#allocation28_spill]] %s6216_s2 }
   0x2   :  { %6228 = sst [smem:[#allocation29_spill]] %s6217_s3 }
   0x3   :  { %6229 = sst [smem:[#allocation30_spill]] %s6218_s4 }
   0x4   :  { %6230 = sst [smem:[#allocation31_spill]] %s6220_s6 }
   0x5   :  { %11 = vsyncpa [#allocation6], 0 }
   0x6   :  { %13 = vsyncpa [#allocation6 + $0x1], 0 }
   0x7   :  { %14 = vsyncpa [#allocation9], 0 }
   0x8   :  { %16 = vsyncpa [#allocation9 + $0x1], 0 }
   0x9   :  { %17 = vsyncpa [#allocation12], 0 }
   0xa   :  { %19 = vsyncpa [#allocation12 + $0x1], 0 }
   0xb   :  { %20 = vsyncpa [#allocation7], 0  ;;  %s5496_s21 = smov 0   ;;  %s5498_s22 = smov 0  }
   0xc   :  { %s5500_s23 = smov 0   ;;  %s5502_s24 = smov 0  }
   0xd   :  { %s5504_s25 = smov 0   ;;  %s5506_s26 = smov 0  }
   0xe LB: > { %6231 = sst [smem:[#allocation24_spill]] %s5436_s23  ;;  %s5525_s27 = sadd.s32 4294967295, %s5448_s26   ;;  %s5448_s26 = sphi %s5506_s26, %s26_s26   ;;  %s5444_s25 = sphi %s5504_s25, %s6251_s25   ;;  %s5440_s24 = sphi %s5502_s24, %s6250_s24   ;;  %s5436_s23 = sphi %s5500_s23, %s6246_s23   ;;  %s5432_s22 = sphi %s5498_s22, %s6249_s22   ;;  %s5428_s21 = sphi %s5496_s21, %s6248_s21  }
   0xf   : > { %6232 = sst [smem:[#allocation25_spill]] %s5448_s26  ;;  %s35_s28 = sadd.s32 1, %s5444_s25 }
  0x10   : > { %p36_p0 = scmp.ge.s32.totalorder %s35_s28, 2  ;;  %s45_s29 = sadd.s32 1, %s5436_s23 }
  0x11   : > { %p52_p1 = scmp.ne.s32.totalorder %s5436_s23, %s5432_s22  ;;  %p53_p2 = scmp.eq.s32.totalorder %s5448_s26, 0 }
  0x12   : > { %s6253_s28 = smov (%p36_p0, %s35_s28), 0  ;;  %p58_p4 = scmp.ne.s32.totalorder %s5432_s22, %s5428_s21 }
  0x13   : > { %6233 = sst [smem:[#allocation26_spill]] %s6253_s28  ;;  %p54_p3 = por %p53_p2, %p52_p1 }
  0x14   : > { %s42_s30 = ssub.s32 %s5444_s25, %s6253_s28  ;;  %p59_p5 = scmp.eq.s32.totalorder %s5525_s27, 0 }
  0x15   : > { %p43_p6 = scmp.eq.s32.totalorder %s42_s30, 0  ;;  %p5086_p8 = scmp.lt.s32.totalorder %s5448_s26, 2 }
  0x16   : > { %p5538_p7 = por %p59_p5, %p58_p4  ;;  %s5547_s9 = sand.u32 1, %s5436_s23  }
  0x17   : > { %s5544_s8 = scalar_select %p43_p6, %s5436_s23, %s45_s29  }
  0x18   : > { %p5549_p9 = pnand %p5086_p8, %p54_p3  ;;  %s6221_s11 = sand.u32 1, %s5448_s26  }
  0x19   : > { %6235 = sst [smem:[#allocation27_spill]] %s5544_s8  ;;  %s3571_s12 = sshll.u32 %s5547_s9, 6 }
  0x1a   : > { %s4758_s13 = sshll.u32 %s5444_s25, 6  ;;  %s6237_s2 = sld [smem:[#allocation28_spill]] }
  0x1b   : > { %s238_s17 = scalar_lea.vmem [#allocation8], %s3571_s12  ;;  %p3582_p10 = scmp.ge.s32.totalorder %s5448_s26, 1 }
  0x1c   : > { %s246_s18 = sshll.u32 %s238_s17, 4  ;;  %s5562_s20 = scalar_lea.sflag [#allocation9], %s6221_s11  ;;  %s247_s18 = int_to_ptr.vmem [resolvable:$true] %s246_s18 }
  0x1d   : > { %s6222_s21 = smov 64   ;;  %s5451_s29 = smov 4  }
  0x1e   : > { %p317_p11 = scmp.lt.s32.totalorder %s5448_s26, 3  ;;  %s3574_s30 = sshll.u32 %s5547_s9, 10 }
  0x1f   : > { %s4759_s12 = sshll.u32 %s5444_s25, 10  ;;  %s6239_s3 = sld [smem:[#allocation29_spill]] }
  0x20   : > { %s243_s16 = scalar_lea.hbm %s6237_s2, %s4758_s13  ;;  %p5572_p12 = pnand %p3582_p10, %p317_p11 }
  0x21   : > { %s244_s19 = sshll.u32 %s243_s16, 4  ;;  %s260_s11 = scalar_lea.vmem [#allocation10], %s3574_s30  ;;  %s245_s19 = int_to_ptr.hbm [resolvable:$true] %s244_s19 }
  0x22   : > { %5076 = dma.hbm_to_vmem [thread:$0]  (!%p5549_p9), %s245_s19, 1024, %s247_s18, %s5562_s20, %s6222_s21, %s6222_s21, %s5451_s29  }
  0x23   : > { %s268_s2 = sshll.u32 %s260_s11, 4  ;;  %s6240_s4 = sld [smem:[#allocation30_spill]]  ;;  %s269_s2 = int_to_ptr.vmem [resolvable:$true] %s268_s2 }
  0x24   : > { %s282_s28 = scalar_lea.vmem [#allocation11], %s3574_s30  ;;  %s6241_s14 = sand.u32 1, %s5448_s26  }
  0x25   : > { %s265_s16 = scalar_lea.hbm %s6239_s3, %s4759_s12  ;;  %s290_s8 = sshll.u32 %s282_s28, 4  ;;  %s291_s8 = int_to_ptr.vmem [resolvable:$true] %s290_s8 }
  0x26   : > { %s266_s17 = sshll.u32 %s265_s16, 4  ;;  %s279_s15 = scalar_lea.sflag [#allocation12], %s6241_s14  ;;  %s267_s17 = int_to_ptr.hbm [resolvable:$true] %s266_s17 }
  0x27   : > { %s6242_s16 = smov 64   ;;  %s5050_s11 = smul.u32 192, %s5547_s9 }
  0x28   : > { %s5051_s18 = smul.u32 192, %s5444_s25  ;;  %s3580_s14 = sshll.u32 %s5547_s9, 2 }
  0x29   : > { %s287_s21 = scalar_lea.hbm %s6240_s4, %s4759_s12  ;;  %s216_s28 = scalar_lea.vmem [#allocation5], %s5050_s11 }
  0x2a   : > { %s288_s23 = sshll.u32 %s287_s21, 4  ;;  %s221_s30 = scalar_lea.hbm %s6215_s1, %s5051_s18  ;;  %s289_s23 = int_to_ptr.hbm [resolvable:$true] %s288_s23 }
  0x2b   : > { %5082 = dma.hbm_to_vmem [thread:$0]  (!%p5549_p9), %s289_s23, 16384, %s291_s8, %s279_s15, %s6242_s16, %s6242_s16, %s5451_s29  }
  0x2c   : > { %s224_s21 = sshll.u32 %s216_s28, 4  ;;  %s222_s3 = sshll.u32 %s221_s30, 4  ;;  %s225_s21 = int_to_ptr.vmem [resolvable:$true] %s224_s21  ;;  %s223_s3 = int_to_ptr.hbm [resolvable:$true] %s222_s3 }
  0x2d   : > { %s213_s4 = scalar_lea.sflag [#allocation6], %s5547_s9  ;;  %s5452_s26 = smov 192  }
  0x2e   : > { %s5453_s6 = smov 12   ;;  %s5454_s23 = smov 1024  }
  0x2f   : > { %5073 = dma.hbm_to_vmem [thread:$0]  (!%p5549_p9), %s223_s3, 3072, %s225_s21, %s213_s4, %s5452_s26, %s5452_s26, %s5453_s6  }
  0x30   : > { %5079 = dma.hbm_to_vmem [thread:$0]  (!%p5549_p9), %s267_s17, 16384, %s269_s2, %s5562_s20, %s5454_s23, %s5454_s23, %s6242_s16  }
  0x31   : > { %s3581_s8 = sshll.u32 %s5444_s25, 2  ;;  %s304_s18 = scalar_lea.vmem [#allocation13], %s3580_s14 }
  0x32   : > { %s308_s11 = scalar_lea.hbm %s6219_s5, %s3581_s8  ;;  %s312_s19 = sshll.u32 %s304_s18, 4  ;;  %s313_s19 = int_to_ptr.vmem [resolvable:$true] %s312_s19 }
  0x33   : > { %s310_s30 = sshll.u32 %s308_s11, 4  ;;  %321 = sbr.rel (%p5572_p12) target bundleno = 1937 (0x791), region = 40  ;;  %s311_s30 = int_to_ptr.hbm [resolvable:$true] %s310_s30 }
  0x34   : > { %5085 = dma.hbm_to_vmem [thread:$0]  (!%p5549_p9), %s311_s30, 64, %s313_s19, %s279_s15  }
  0x35   : > { %s323_s3 = sand.u32 (!%p5572_p12), 1, %s5432_s22  }
  0x36   : > { %s5052_s4 = smul.u32 (!%p5572_p12), 192, %s323_s3  ;;  %s324_s2 = scalar_lea.sflag (!%p5572_p12), [#allocation6], %s323_s3 }
  0x38   : > { %s5610_s6 = scalar_lea.vmem [#allocation5], %s5052_s4 }
  0x39   : > { %5407 = dma.done.wait (%p5538_p7), %s324_s2, 3072  }
  0x3a   : > { %5409 = vsyncadd (%p5538_p7), %s324_s2, 4294964224  ;;  %s333_s26 = sand.u32 1, %s5525_s27   ;;  %s3583_s9 = sshll.u32 %s323_s3, 6 }
  0x3b   : > { %s334_s10 = scalar_lea.sflag [#allocation9], %s333_s26  ;;  %s5617_s20 = scalar_lea.vmem [#allocation8], %s3583_s9 }
  0x3c   : > { %5411 = dma.done.wait (%p5538_p7), %s334_s10, 17408  }
  0x3d   : > { %5413 = vsyncadd (%p5538_p7), %s334_s10, 4294949888  ;;  %s3584_s13 = sshll.u32 %s323_s3, 10  ;;  %s354_s15 = scalar_lea.sflag [#allocation12], %s333_s26 }
  0x3e   : > { %s5623_s17 = scalar_lea.vmem [#allocation10], %s3584_s13  ;;  %s5625_s16 = scalar_lea.vmem [#allocation11], %s3584_s13 }
  0x3f   : > { %5415 = dma.done.wait (%p5538_p7), %s354_s15, 16448  }
  0x40   : > { %5417 = vsyncadd (%p5538_p7), %s354_s15, 4294950848  ;;  %s3586_s28 = sshll.u32 %s323_s3, 2  ;;  %p5087_p13 = scmp.eq.s32.totalorder %s5440_s24, 0 }
  0x41   : > { %s426_s23 = sshll.u32 %s6214_s0, 4  ;;  %s5455_s8 = smov [#allocation2]   ;;  %s427_s23 = int_to_ptr.hbm [resolvable:$true] %s426_s23 }
  0x42   : > { %s428_s29 = sshll.u32 %s5455_s8, 4  ;;  %s5635_s12 = scalar_lea.vmem [#allocation13], %s3586_s28  ;;  %s429_s29 = int_to_ptr.vmem [resolvable:$true] %s428_s29 }
  0x43   : > { %5064 = dma.hbm_to_vmem [thread:$0]  (%p5087_p13), %s427_s23, 256, %s429_s29, [#allocation4] }
  0x44   : > { %5419 = dma.done.wait (%p5087_p13), [#allocation4], 256 }
  0x45   : > { %5421 = vsyncadd (%p5087_p13), [#allocation4], 4294967040  ;;  %v3674_v0 = vld [vmem:[%s5610_s6 + $0xa8] sm:$0xf]  ;;  %v4783_v1 = vld [vmem:[%s5610_s6 + $0xb0] sm:$0xf0] }
  0x46   : > { %v4782_v2 = vld [vmem:[%s5610_s6 + $0xac] sm:$0xf]  ;;  %v3675_v3 = vor.u32 %v4783_v1, %v3674_v0  ;;  %v3676_v4 = vld [vmem:[%s5610_s6 + $0xb4] sm:$0xf0]  ;;  %v3662_v5 = vld [vmem:[%s5610_s6 + $0x90] sm:$0xf] }
  0x47   : > { %v4780_v6 = vld [vmem:[%s5610_s6 + $0x98] sm:$0xf0]  ;;  %v3679_v7 = vor.u32 %v4782_v2, %v3676_v4  ;;  %v4779_v8 = vld [vmem:[%s5610_s6 + $0x94] sm:$0xf]  ;;  %v3664_v9 = vld [vmem:[%s5610_s6 + $0x9c] sm:$0xf0] }
  0x48   : > { %599 = vmatpush.bf16.msra.mxu0 %v3675_v3  ;;  %v3663_v10 = vor.u32 %v4780_v6, %v3662_v5  ;;  %v3667_v11 = vor.u32 %v4779_v8, %v3664_v9  ;;  %v3650_v12 = vld [vmem:[%s5610_s6 + $0x78] sm:$0xf]  ;;  %v4777_v13 = vld [vmem:[%s5610_s6 + $0x80] sm:$0xf0]  ;;  %v4776_v14 = vld [vmem:[%s5610_s6 + $0x7c] sm:$0xf] }
  0x49   : > { %613 = vmatpush.bf16.msra.mxu1 %v3679_v7  ;;  %v3652_v15 = vld [vmem:[%s5610_s6 + $0x84] sm:$0xf0]  ;;  %v3651_v16 = vor.u32 %v4777_v13, %v3650_v12  ;;  %v3638_v18 = vld [vmem:[%s5610_s6 + $0x60] sm:$0xf]  ;;  %v4774_v19 = vld [vmem:[%s5610_s6 + $0x68] sm:$0xf0] }
  0x4a   : > { %v3655_v17 = vor.u32 %v4776_v14, %v3652_v15  ;;  %v4773_v20 = vld [vmem:[%s5610_s6 + $0x64] sm:$0xf]  ;;  %v3640_v21 = vld [vmem:[%s5610_s6 + $0x6c] sm:$0xf0]  ;;  %v3639_v22 = vor.u32 %v4774_v19, %v3638_v18  ;;  %v3626_v24 = vld [vmem:[%s5610_s6 + $0x48] sm:$0xf] }
  0x4b   : > { %v3643_v23 = vor.u32 %v4773_v20, %v3640_v21  ;;  %v4771_v25 = vld [vmem:[%s5610_s6 + $0x50] sm:$0xf0]  ;;  %v4770_v26 = vld [vmem:[%s5610_s6 + $0x4c] sm:$0xf]  ;;  %v3628_v27 = vld [vmem:[%s5610_s6 + $0x54] sm:$0xf0] }
  0x4c   : > { %600 = vmatpush.bf16.msra.mxu0 %v3663_v10  ;;  %v3627_v28 = vor.u32 %v4771_v25, %v3626_v24  ;;  %v3631_v29 = vor.u32 %v4770_v26, %v3628_v27  ;;  %v3614_v30 = vld [vmem:[%s5610_s6 + $0x30] sm:$0xf]  ;;  %v4768_v31 = vld [vmem:[%s5610_s6 + $0x38] sm:$0xf0]  ;;  %v4767_v32 = vld [vmem:[%s5610_s6 + $0x34] sm:$0xf] }
  0x4d   : > { %614 = vmatpush.bf16.msra.mxu1 %v3667_v11  ;;  %v3616_v33 = vld [vmem:[%s5610_s6 + $0x3c] sm:$0xf0]  ;;  %v3615_v34 = vor.u32 %v4768_v31, %v3614_v30  ;;  %v3602_v36 = vld [vmem:[%s5610_s6 + $0x18] sm:$0xf]  ;;  %v4765_v37 = vld [vmem:[%s5610_s6 + $0x20] sm:$0xf0] }
  0x4e   : > { %v3619_v35 = vor.u32 %v4767_v32, %v3616_v33  ;;  %v4764_v38 = vld [vmem:[%s5610_s6 + $0x1c] sm:$0xf]  ;;  %v3604_v39 = vld [vmem:[%s5610_s6 + $0x24] sm:$0xf0]  ;;  %v3603_v40 = vor.u32 %v4765_v37, %v3602_v36  ;;  %v3590_v42 = vld [vmem:[%s5610_s6] sm:$0xf] }
  0x4f   : > { %v3607_v41 = vor.u32 %v4764_v38, %v3604_v39  ;;  %v4762_v43 = vld [vmem:[%s5610_s6 + $0x8] sm:$0xf0]  ;;  %v4761_v44 = vld [vmem:[%s5610_s6 + $0x4] sm:$0xf]  ;;  %v3592_v45 = vld [vmem:[%s5610_s6 + $0xc] sm:$0xf0] }
  0x50   : > { %601 = vmatpush.bf16.msra.mxu0 %v3651_v16  ;;  %v3591_v46 = vor.u32 %v4762_v43, %v3590_v42  ;;  %v5669_v47 = vld [vmem:[#allocation2] sm:$0xff]  ;;  %v5671_v48 = vld [vmem:[#allocation2 + $0x8] sm:$0xff]  ;;  %v3595_v49 = vor.u32 %v4761_v44, %v3592_v45  ;;  %v4784_v52 = vld [vmem:[%s5610_s6 + $0xb8] sm:$0xf0]  ;;  %vm652_vm0 = vcmask 523264   ;;  %s5456_s7 = smov 64  }
  0x51   : > { %615 = vmatpush.bf16.msra.mxu1 %v3655_v17  ;;  %v5675_v50 = vpack.c.bf16 %v5671_v48, %v5669_v47  ;;  %v3682_v51 = vld [vmem:[%s5610_s6 + $0xb0] sm:$0xf]  ;;  %v3670_v53 = vld [vmem:[%s5610_s6 + $0x98] sm:$0xf]  ;;  %v4781_v55 = vld [vmem:[%s5610_s6 + $0xa0] sm:$0xf0] }
  0x52   : > { %v3683_v54 = vor.u32 %v4784_v52, %v3682_v51  ;;  %v3671_v56 = vor.u32 %v4781_v55, %v3670_v53  ;;  %v3658_v57 = vld [vmem:[%s5610_s6 + $0x80] sm:$0xf]  ;;  %v4778_v58 = vld [vmem:[%s5610_s6 + $0x88] sm:$0xf0]  ;;  %v3646_v2 = vld [vmem:[%s5610_s6 + $0x68] sm:$0xf] }
  0x53   : > { %v3659_v62 = vor.u32 %v4778_v58, %v3658_v57  ;;  %v4775_v3 = vld [vmem:[%s5610_s6 + $0x70] sm:$0xf0]  ;;  %v3634_v7 = vld [vmem:[%s5610_s6 + $0x50] sm:$0xf]  ;;  %v4772_v8 = vld [vmem:[%s5610_s6 + $0x58] sm:$0xf0] }
  0x54   : > { %602 = vmatpush.bf16.msra.mxu0 %v3639_v22  ;;  %627 = vmatpush.bf16.msra.mxu2 %v3683_v54  ;;  %v3647_v5 = vor.u32 %v4775_v3, %v3646_v2  ;;  %v3635_v12 = vor.u32 %v4772_v8, %v3634_v7  ;;  %v3622_v16 = vld [vmem:[%s5610_s6 + $0x38] sm:$0xf]  ;;  %v4769_v17 = vld [vmem:[%s5610_s6 + $0x40] sm:$0xf0]  ;;  %v3610_v21 = vld [vmem:[%s5610_s6 + $0x20] sm:$0xf] }
  0x55   : > { %616 = vmatpush.bf16.msra.mxu1 %v3643_v23  ;;  %v3623_v20 = vor.u32 %v4769_v17, %v3622_v16  ;;  %v4766_v22 = vld [vmem:[%s5610_s6 + $0x28] sm:$0xf0]  ;;  %v3598_v25 = vld [vmem:[%s5610_s6 + $0x8] sm:$0xf]  ;;  %v4763_v26 = vld [vmem:[%s5610_s6 + $0x10] sm:$0xf0] }
  0x56   : > { %v3611_v24 = vor.u32 %v4766_v22, %v3610_v21  ;;  %vm695_vm2 = vcmask 64512   ;;  %vm719_vm3 = vcmask 1043456   ;;  %p4752_p0 = scmp.ne.s32.totalorder %s5440_s24, 1 }
  0x58   : > { %603 = vmatpush.bf16.msra.mxu0 %v3627_v28  ;;  %628 = vmatpush.bf16.msra.mxu2 %v3671_v56  ;;  %v3599_v28 = vor.u32 %v4763_v26, %v3598_v25 }
  0x59   : > { %617 = vmatpush.bf16.msra.mxu1 %v3631_v29 }
  0x5c   : > { %604 = vmatpush.bf16.msra.mxu0 %v3615_v34  ;;  %629 = vmatpush.bf16.msra.mxu2 %v3659_v62  ;;  %v647_v34 = vlaneseq }
  0x5d   : > { %618 = vmatpush.bf16.msra.mxu1 %v3619_v35 }
  0x5e   : > { %v648_v35 = vshrl.u32 %v647_v34, 7  ;;  %v650_v36 = vand.u32 127, %v647_v34  ;;  %v4793_v34 = vld [vmem:[%s5617_s20 + $0x38] sm:$0xff] }
  0x60   : > { %605 = vmatpush.bf16.msra.mxu0 %v3603_v40  ;;  %630 = vmatpush.bf16.msra.mxu2 %v3647_v5  ;;  %vm651_vm1 = vcmp.gt.s32.totalorder %v650_v36, %v648_v35  ;;  %v4792_v35 = vld [vmem:[%s5617_s20 + $0x30] sm:$0xff] }
  0x61   : > { %619 = vmatpush.bf16.msra.mxu1 %v3607_v41 }
  0x64   : > { %606 = vmatpush.bf16.msra.mxu0 %v3591_v46  ;;  %631 = vmatpush.bf16.msra.mxu2 %v3635_v12 }
  0x65   : > { %620 = vmatpush.bf16.msra.mxu1 %v3595_v49 }
  0x67   : > { %607 = vmatmul.bf16.vlgmr.msra.gmra.mxu0 %v5675_v50 }
  0x68   : > { %621 = vmatmul.bf16.vlgmr.msra.gmra.mxu1 %v5675_v50  ;;  %632 = vmatpush.bf16.msra.mxu2 %v3623_v20 }
  0x69   : > { %987 = vmatpush.bf16.msrb.mxu1 %v4793_v34  ;;  %v4899_v34 = vld [vmem:[%s5623_s17 + $0x344] sm:$0xf0] }
  0x6c   : > { %633 = vmatpush.bf16.msra.mxu2 %v3611_v24 }
  0x6d   : > { %988 = vmatpush.bf16.msrb.mxu1 %v4792_v35  ;;  %v4891_v35 = vld [vmem:[%s5623_s17 + $0x30c] sm:$0xf] }
  0x70   : > { %634 = vmatpush.bf16.msra.mxu2 %v3599_v28 }
  0x73   : > { %635 = vmatmul.bf16.vlgmr.msra.gmra.mxu2 %v5675_v50 }
  0xe4   : > { %v608_v59 = vpop.f32.mrf.mxu0 }
  0xe5   : > { %v622_v60 = vpop.f32.mrf.mxu1  ;;  %v641_v63 = vpack.c.bf16 %v608_v59, %v608_v59 }
  0xe6   : > { %v643_v61 = vpack.c.bf16 %v622_v60, %v622_v60 }
  0xe7   : > { %v762_v6 = vunpack.c.l.b16 %v641_v63 }
  0xe8   : > { %v657_v0 = vsel %vm652_vm0, %v643_v61, 0  ;;  %v767_v1 = vunpack.c.l.b16 %v643_v61 }
  0xe9   : > { %666 = vmatpush.bf16.xpose.msra.mxu3 %v657_v0  ;;  %v763_v13 = vpack.c.b16 %v762_v6, %v762_v6 }
  0xea   : > { %v768_v4 = vpack.c.b16 %v767_v1, %v767_v1 }
  0xec   : > { %769 = vrot.lane.b32.xlu0 %v768_v4, %s5456_s7  ;;  %v610_v11 = vpop.f32.mrf.mxu0 }
  0xed   : > { %v624_v9 = vpop.f32.mrf.mxu1  ;;  %v642_v18 = vpack.c.bf16 %v610_v11, %v610_v11 }
  0xee   : > { %v644_v10 = vpack.c.bf16 %v624_v9, %v624_v9 }
  0xef   : > { %v791_v23 = vunpack.c.l.b16 %v642_v18 }
  0xf0   : > { %3684 = vmatmul.msk.bf16.vlgmr.msra.gmra.mxu3 %vm652_vm0, %v641_v63  ;;  %v676_v14 = vsel %vm652_vm0, %v644_v10, 0  ;;  %v796_v15 = vunpack.c.l.b16 %v644_v10 }
  0xf1   : > { %685 = vmatpush.bf16.xpose.msrb.mxu3 %v676_v14  ;;  %v792_v27 = vpack.c.b16 %v791_v23, %v791_v23 }
  0xf2   : > { %v797_v19 = vpack.c.b16 %v796_v15, %v796_v15 }
  0xf4   : > { %798 = vrot.lane.b32.xlu1 %v797_v19, %s5456_s7  ;;  %764 = vrot.lane.b32.xlu0 %v763_v13, %s5456_s7 }
  0xf6   : > { %v636_v45 = vpop.f32.mrf.mxu2 }
  0xf7   : > { %v645_v46 = vpack.c.bf16 %v636_v45, %v636_v45 }
  0xf9   : > { %v721_v49 = vsel %vm719_vm3, %v645_v46, 0  ;;  %v842_v54 = vunpack.c.l.b16 %v645_v46 }
  0xfa   : > { %730 = vmatpush.bf16.msra.mxu3 %v721_v49 }
  0xfb   : > { %v843_v55 = vpack.c.b16 %v842_v54, %v842_v54 }
  0xfc   : > { %793 = vrot.lane.b32.xlu1 %v792_v27, %s5456_s7 }
  0xfe   : > { %v638_v51 = vpop.f32.mrf.mxu2 }
  0xff   : > { %v646_v52 = vpack.c.bf16 %v638_v51, %v638_v51 }
 0x100   : > { %3685 = vmatmul.msk.bf16.vlgmr.msrb.gmra.mxu3 %vm652_vm0, %v642_v18 }
 0x101   : > { %v740_v53 = vsel %vm719_vm3, %v646_v52, 0  ;;  %v866_v56 = vunpack.c.l.b16 %v646_v52 }
 0x102   : > { %749 = vmatpush.bf16.msrb.mxu0 %v740_v53 }
 0x103   : > { %v867_v57 = vpack.c.b16 %v866_v56, %v866_v56  ;;  %v4789_v56 = vld [vmem:[%s5617_s20 + $0x18] sm:$0xff] }
 0x15e   : > { %v770_v29 = vpop.permute.xlu0 %769 }
 0x15f   : > { %v775_v30 = vsel %vm652_vm0, %v770_v29, 0 }
 0x160   : > { %784 = vmatpush.bf16.xpose.msrb.mxu2 %v775_v30 }
 0x166   : > { %v799_v31 = vpop.permute.xlu1 %798  ;;  %v765_v32 = vpop.permute.xlu0 %764 }
 0x167   : > { %v804_v33 = vsel %vm652_vm0, %v799_v31, 0  ;;  %3688 = vmatmul.msk.bf16.vlgmr.msrb.gmra.mxu2 %vm652_vm0, %v765_v32 }
 0x168   : > { %813 = vmatpush.bf16.xpose.msra.mxu2 %v804_v33 }
 0x16e   : > { %v794_v40 = vpop.permute.xlu1 %793 }
 0x173   : > { %v668_v37 = vpop.f32.mrf.mxu3 }
 0x174   : > { %v693_v38 = vsel %vm651_vm1, -10000000.0, %v668_v37  ;;  %v4791_v37 = vld [vmem:[%s5617_s20 + $0x28] sm:$0xff] }
 0x175   : > { %v696_v39 = vsel %vm695_vm2, %v693_v38, -inf  ;;  %989 = vmatpush.bf16.msrb.mxu1 %v4791_v37  ;;  %v4124_v37 = vld [vmem:[%s5623_s17 + $0x348] sm:$0xf0] }
 0x176   : > { %697 = vmax.xlane.f32.xlu2 %v696_v39 }
 0x177   : > { %3689 = vmatmul.msk.bf16.vlgmr.msra.gmra.mxu2 %vm652_vm0, %v794_v40 }
 0x17b   : > { %v670_v41 = vpop.f32.mrf.mxu3 }
 0x183   : > { %v687_v42 = vpop.f32.mrf.mxu3 }
 0x184   : > { %v694_v43 = vsel %vm651_vm1, -10000000.0, %v687_v42 }
 0x185   : > { %v699_v44 = vsel %vm695_vm2, %v694_v43, -inf }
 0x186   : > { %700 = vmax.xlane.f32.xlu2 %v699_v44 }
 0x18b   : > { %v689_v50 = vpop.f32.mrf.mxu3 }
 0x19e   : > { %844 = vrot.lane.b32.xlu2 %v843_v55, %s5456_s7  ;;  %v4790_v55 = vld [vmem:[%s5617_s20 + $0x20] sm:$0xff] }
 0x19f   : > { %990 = vmatpush.bf16.msrb.mxu1 %v4790_v55  ;;  %v4858_v55 = vld [vmem:[%s5623_s17 + $0x204] sm:$0xf] }
 0x1a3   : > { %991 = vmatpush.bf16.msrb.mxu1 %v4789_v56 }
 0x1a6   : > { %868 = vrot.lane.b32.xlu2 %v867_v57, %s5456_s7  ;;  %v4788_v57 = vld [vmem:[%s5617_s20 + $0x10] sm:$0xff] }
 0x1a7   : > { %992 = vmatpush.bf16.msrb.mxu1 %v4788_v57  ;;  %v3988_v57 = vld [vmem:[%s5623_s17 + $0x240] sm:$0xf0] }
 0x1e9   : > { %v698_v58 = vpop.xlane.xlu2 %697 }
 0x1ea   : > { %v702_v59 = vsub.f32 %v693_v38, %v698_v58  ;;  %v786_v60 = vpop.f32.mrf.mxu2  ;;  %v4787_v58 = vld [vmem:[%s5617_s20 + $0x8] sm:$0xff] }
 0x1eb   : > { %v819_v61 = vsel %vm651_vm1, -10000000.0, %v786_v60  ;;  %993 = vmatpush.bf16.msrb.mxu1 %v4787_v58  ;;  %v3994_v58 = vld [vmem:[%s5623_s17 + $0x208] sm:$0xf] }
 0x1ec   : > { %v704_v62 = vmul.f32 1.442695, %v702_v59  ;;  %v821_v63 = vsel %vm695_vm2, %v819_v61, -inf  ;;  %v4786_v59 = vld [vmem:[%s5617_s20] sm:$0xff] }
 0x1ed   : > { %822 = vmax.xlane.f32.xlu0 %v821_v63 }
 0x1ee   : > { %5149 = vpow2.f32 %v704_v62 }
 0x1ef   : > { %994 = vmatpush.bf16.msrb.mxu1 %v4786_v59  ;;  %v4867_v59 = vld [vmem:[%s5623_s17 + $0x244] sm:$0xf0] }
 0x1f2   : > { %v788_v0 = vpop.f32.mrf.mxu2 }
 0x1f4   : > { %v5150_v1 = vpop.eup %5149 }
 0x1f5   : > { %v714_v2 = vpack.c.bf16 %v5150_v1, %v5150_v1  ;;  %v708_v13 = vsel %vm695_vm2, %v5150_v1, 0.0 }
 0x1f7   : > { %3686 = vmatmul.msk.bf16.vlgmr.msra.gmra.mxu3 %vm695_vm2, %v714_v2 }
 0x1f9   : > { %v701_v3 = vpop.xlane.xlu2 %700 }
 0x1fa   : > { %v703_v4 = vsub.f32 %v694_v43, %v701_v3  ;;  %v815_v5 = vpop.f32.mrf.mxu2 }
 0x1fb   : > { %v820_v6 = vsel %vm651_vm1, -10000000.0, %v815_v5 }
 0x1fc   : > { %v706_v7 = vmul.f32 1.442695, %v703_v4  ;;  %v824_v8 = vsel %vm695_vm2, %v820_v6, -inf }
 0x1fd   : > { %825 = vmax.xlane.f32.xlu1 %v824_v8 }
 0x1fe   : > { %5151 = vpow2.f32 %v706_v7 }
 0x201   : > { %v845_v9 = vpop.permute.xlu2 %844 }
 0x202   : > { %v817_v10 = vpop.f32.mrf.mxu2  ;;  %v850_v11 = vsel %vm719_vm3, %v845_v9, 0 }
 0x203   : > { %859 = vmatpush.bf16.msrb.mxu3 %v850_v11 }
 0x204   : > { %v5152_v12 = vpop.eup %5151 }
 0x205   : > { %709 = vadd.xlane.f32.xlu1 %v708_v13  ;;  %v715_v14 = vpack.c.bf16 %v5152_v12, %v5152_v12  ;;  %v711_v32 = vsel %vm695_vm2, %v5152_v12, 0.0  ;;  %v5457_v13 = vmov 128.0  }
 0x207   : > { %3687 = vmatmul.msk.bf16.vlgmr.msrb.gmra.mxu0 %vm695_vm2, %v715_v14 }
 0x209   : > { %v869_v15 = vpop.permute.xlu2 %868 }
 0x20a   : > { %v874_v16 = vsel %vm719_vm3, %v869_v15, 0 }
 0x20b   : > { %883 = vmatpush.bf16.msra.mxu0 %v874_v16  ;;  %v4178_v16 = vld [vmem:[%s5623_s17 + $0x380] sm:$0xf] }
 0x260   : > { %v823_v17 = vpop.xlane.xlu0 %822 }
 0x261   : > { %v827_v18 = vsub.f32 %v819_v61, %v823_v17  ;;  %v4914_v17 = vld [vmem:[%s5623_s17 + $0x3bc] sm:$0xf0] }
 0x263   : > { %v829_v19 = vmul.f32 1.442695, %v827_v18  ;;  %v4906_v18 = vld [vmem:[%s5623_s17 + $0x384] sm:$0xf] }
 0x265   : > { %5153 = vpow2.f32 %v829_v19  ;;  %v4180_v19 = vld [vmem:[%s5623_s17 + $0x3c0] sm:$0xf0] }
 0x26b   : > { %v5154_v20 = vpop.eup %5153 }
 0x26c   : > { %v839_v21 = vpack.c.bf16 %v5154_v20, %v5154_v20  ;;  %v833_v22 = vsel %vm695_vm2, %v5154_v20, 0.0  ;;  %v4186_v20 = vld [vmem:[%s5623_s17 + $0x388] sm:$0xf] }
 0x26d   : > { %834 = vadd.xlane.f32.xlu2 %v833_v22  ;;  %v4183_v22 = vor.u32 %v4906_v18, %v4180_v19 }
 0x26e   : > { %3690 = vmatmul.msk.bf16.vlgmr.msrb.gmra.mxu3 %vm695_vm2, %v839_v21  ;;  %v4915_v21 = vld [vmem:[%s5623_s17 + $0x3c4] sm:$0xf0] }
 0x26f   : > { %1838 = vmatpush.bf16.msra.mxu3 %v4183_v22 }
 0x270   : > { %v826_v23 = vpop.xlane.xlu1 %825 }
 0x271   : > { %v828_v24 = vsub.f32 %v820_v6, %v826_v23  ;;  %v4187_v23 = vor.u32 %v4915_v21, %v4186_v20 }
 0x273   : > { %v831_v25 = vmul.f32 1.442695, %v828_v24  ;;  %v4907_v24 = vld [vmem:[%s5623_s17 + $0x38c] sm:$0xf]  ;;  %1852 = vmatpush.bf16.msrb.mxu0 %v4187_v23  ;;  %v3858_v23 = vld [vmem:[%s5623_s17 + $0x100] sm:$0xf] }
 0x275   : > { %5155 = vpow2.f32 %v831_v25  ;;  %v4188_v25 = vld [vmem:[%s5623_s17 + $0x3c8] sm:$0xf0] }
 0x278   : > { %v710_v60 = vpop.xlane.xlu1 %709 }
 0x27a   : > { %v732_v26 = vpop.f32.mrf.mxu3 }
 0x27b   : > { %v5156_v27 = vpop.eup %5155 }
 0x27c   : > { %v840_v28 = vpack.c.bf16 %v5156_v27, %v5156_v27  ;;  %v836_v29 = vsel %vm695_vm2, %v5156_v27, 0.0  ;;  %v4191_v27 = vor.u32 %v4907_v24, %v4188_v25  ;;  %v4834_v24 = vld [vmem:[%s5623_s17 + $0x13c] sm:$0xf0]  ;;  %v4826_v25 = vld [vmem:[%s5623_s17 + $0x104] sm:$0xf] }
 0x27d   : > { %837 = vadd.xlane.f32.xlu0 %v836_v29  ;;  %v4890_v29 = vld [vmem:[%s5623_s17 + $0x304] sm:$0xf] }
 0x27e   : > { %3691 = vmatmul.msk.bf16.vlgmr.msra.gmra.mxu0 %vm695_vm2, %v840_v28  ;;  %v4898_v28 = vld [vmem:[%s5623_s17 + $0x33c] sm:$0xf0]  ;;  %1866 = vmatpush.bf16.msra.mxu1 %v4191_v27  ;;  %v3860_v27 = vld [vmem:[%s5623_s17 + $0x140] sm:$0xf0] }
 0x282   : > { %v734_v30 = vpop.f32.mrf.mxu3 }
 0x283   : > { %v4116_v30 = vld [vmem:[%s5623_s17 + $0x340] sm:$0xf0] }
 0x284   : > { %v751_v31 = vpop.f32.mrf.mxu0 }
 0x285   : > { %712 = vadd.xlane.f32.xlu0 %v711_v32  ;;  %v4119_v32 = vor.u32 %v4890_v29, %v4116_v30  ;;  %v4835_v29 = vld [vmem:[%s5623_s17 + $0x144] sm:$0xf0]  ;;  %v3863_v30 = vor.u32 %v4826_v25, %v3860_v27  ;;  %v4074_v27 = vld [vmem:[%s5623_s17 + $0x298] sm:$0xf] }
 0x287   : > { %1839 = vmatpush.bf16.msra.mxu3 %v4119_v32  ;;  %v3868_v32 = vld [vmem:[%s5623_s17 + $0x148] sm:$0xf0] }
 0x28c   : > { %v753_v33 = vpop.f32.mrf.mxu0 }
 0x28d   : > { %v4122_v33 = vld [vmem:[%s5623_s17 + $0x308] sm:$0xf] }
 0x2e0   : > { %v835_v36 = vpop.xlane.xlu2 %834 }
 0x2e1   : > { %5157 = vrcp.f32 %v835_v36  ;;  %v4123_v36 = vor.u32 %v4899_v34, %v4122_v33  ;;  %v3794_v34 = vld [vmem:[%s5623_s17 + $0x80] sm:$0xf] }
 0x2e3   : > { %1853 = vmatpush.bf16.msrb.mxu0 %v4123_v36  ;;  %v4810_v36 = vld [vmem:[%s5623_s17 + $0x84] sm:$0xf] }
 0x2e7   : > { %v5158_v38 = vpop.eup %5157 }
 0x2f0   : > { %v838_v40 = vpop.xlane.xlu0 %837 }
 0x2f1   : > { %v861_v39 = vpop.f32.mrf.mxu3  ;;  %5159 = vrcp.f32 %v838_v40  ;;  %v4127_v40 = vor.u32 %v4891_v35, %v4124_v37  ;;  %v4818_v35 = vld [vmem:[%s5623_s17 + $0xbc] sm:$0xf0] }
 0x2f2   : > { %v891_v41 = vmul.f32 %v5158_v38, %v861_v39  ;;  %5161 = vrcp.f32 %v710_v60  ;;  %v4050_v38 = vld [vmem:[%s5623_s17 + $0x280] sm:$0xf]  ;;  %v4859_v60 = vld [vmem:[%s5623_s17 + $0x20c] sm:$0xf]  ;;  %v3795_v37 = vor.u32 %v4818_v35, %v3794_v34  ;;  %v4868_v34 = vld [vmem:[%s5623_s17 + $0x24c] sm:$0xf0] }
 0x2f3   : > { %v4882_v39 = vld [vmem:[%s5623_s17 + $0x2bc] sm:$0xf0]  ;;  %1867 = vmatpush.bf16.msra.mxu1 %v4127_v40  ;;  %v4819_v40 = vld [vmem:[%s5623_s17 + $0xc4] sm:$0xf0]  ;;  %v4860_v35 = vld [vmem:[%s5623_s17 + $0x214] sm:$0xf] }
 0x2f4   : > { %v893_v42 = vpack.c.bf16 %v891_v41, %v891_v41  ;;  %v4874_v41 = vld [vmem:[%s5623_s17 + $0x284] sm:$0xf] }
 0x2f6   : > { %v897_v43 = vunpack.c.l.b16 %v893_v42  ;;  %v4052_v42 = vld [vmem:[%s5623_s17 + $0x2c0] sm:$0xf0] }
 0x2f7   : > { %v5160_v46 = vpop.eup %5159 }
 0x2f8   : > { %v899_v44 = vpack.c.b16 %v897_v43, %v897_v43  ;;  %v5162_v61 = vpop.eup %5161  ;;  %v713_v62 = vpop.xlane.xlu0 %712  ;;  %v4058_v43 = vld [vmem:[%s5623_s17 + $0x288] sm:$0xf] }
 0x2f9   : > { %v863_v45 = vpop.f32.mrf.mxu3  ;;  %v757_v63 = vmul.f32 %v5162_v61, %v732_v26  ;;  %5163 = vrcp.f32 %v713_v62  ;;  %v4114_v26 = vld [vmem:[%s5623_s17 + $0x300] sm:$0xf]  ;;  %v3996_v61 = vld [vmem:[%s5623_s17 + $0x248] sm:$0xf0] }
 0x2fa   : > { %901 = vrot.lane.b32.xlu1 %v899_v44, %s5456_s7  ;;  %5165 = vrcp.f32 %v5457_v13  ;;  %v4051_v45 = vor.u32 %v4882_v39, %v4050_v38  ;;  %v3796_v38 = vld [vmem:[%s5623_s17 + $0xc0] sm:$0xf0]  ;;  %v3802_v39 = vld [vmem:[%s5623_s17 + $0x88] sm:$0xf] }
 0x2fb   : > { %v885_v49 = vpop.f32.mrf.mxu0  ;;  %v759_v0 = vpack.c.bf16 %v757_v63, %v757_v63 }
 0x2fc   : > { %v892_v50 = vmul.f32 %v5160_v46, %v885_v49  ;;  %v4883_v46 = vld [vmem:[%s5623_s17 + $0x2c4] sm:$0xf0]  ;;  %v4875_v49 = vld [vmem:[%s5623_s17 + $0x28c] sm:$0xf] }
 0x2fe   : > { %v894_v51 = vpack.c.bf16 %v892_v50, %v892_v50  ;;  %v4060_v50 = vld [vmem:[%s5623_s17 + $0x2c8] sm:$0xf0] }
 0x2ff   : > { %v5164_v3 = vpop.eup %5163  ;;  %v4063_v56 = vor.u32 %v4875_v49, %v4060_v50  ;;  %v4802_v49 = vld [vmem:[%s5623_s17 + $0x3c] sm:$0xf0]  ;;  %v4794_v50 = vld [vmem:[%s5623_s17 + $0x4] sm:$0xf] }
 0x300   : > { %v898_v52 = vunpack.c.l.b16 %v894_v51  ;;  %v758_v4 = vmul.f32 %v5164_v3, %v751_v31  ;;  %v5750_v14 = vpop.eup %5165  ;;  %v4115_v31 = vor.u32 %v4898_v28, %v4114_v26  ;;  %v4055_v51 = vor.u32 %v4874_v41, %v4052_v42  ;;  %v4850_v3 = vld [vmem:[%s5623_s17 + $0x1bc] sm:$0xf0]  ;;  %v3866_v28 = vld [vmem:[%s5623_s17 + $0x108] sm:$0xf] }
 0x301   : > { %v1007_v15 = vmul.f32 128.0, %v5750_v14  ;;  %vm1011_vm4 = vweird.f32 %v5750_v14  ;;  %1868 = vmatpush.bf16.msra.mxu1 %v4063_v56  ;;  %v3859_v26 = vor.u32 %v4834_v24, %v3858_v23  ;;  %v3799_v41 = vor.u32 %v4810_v36, %v3796_v38  ;;  %v4884_v23 = vld [vmem:[%s5623_s17 + $0x2cc] sm:$0xf0]  ;;  %v4876_v24 = vld [vmem:[%s5623_s17 + $0x294] sm:$0xf] }
 0x302   : > { %v900_v53 = vpack.c.b16 %v898_v52, %v898_v52  ;;  %v760_v5 = vpack.c.bf16 %v758_v4, %v758_v4  ;;  %v4059_v52 = vor.u32 %v4883_v46, %v4058_v43  ;;  %1840 = vmatpush.bf16.msra.mxu3 %v4055_v51  ;;  %v4842_v4 = vld [vmem:[%s5623_s17 + $0x184] sm:$0xf]  ;;  %v3803_v42 = vor.u32 %v4819_v40, %v3802_v39  ;;  %v4811_v43 = vld [vmem:[%s5623_s17 + $0x8c] sm:$0xf]  ;;  %v3730_v46 = vld [vmem:[%s5623_s17] sm:$0xf] }
 0x303   : > { %v887_v54 = vpop.f32.mrf.mxu0  ;;  %v3731_v51 = vor.u32 %v4802_v49, %v3730_v46  ;;  %v4010_v38 = vld [vmem:[%s5623_s17 + $0x218] sm:$0xf]  ;;  %v4852_v46 = vld [vmem:[%s5623_s17 + $0x1cc] sm:$0xf0]  ;;  %v4844_v49 = vld [vmem:[%s5623_s17 + $0x194] sm:$0xf] }
 0x304   : > { %903 = vrot.lane.b32.xlu0 %v900_v53, %s5456_s7  ;;  %v3986_v53 = vld [vmem:[%s5623_s17 + $0x200] sm:$0xf]  ;;  %1854 = vmatpush.bf16.msrb.mxu0 %v4059_v52  ;;  %v3732_v52 = vld [vmem:[%s5623_s17 + $0x40] sm:$0xf0]  ;;  %v4869_v39 = vld [vmem:[%s5623_s17 + $0x254] sm:$0xf0] }
 0x305   : > { %v4866_v54 = vld [vmem:[%s5623_s17 + $0x23c] sm:$0xf0] }
 0x306   : > { %v3987_v63 = vor.u32 %v4866_v54, %v3986_v53  ;;  %v3738_v53 = vld [vmem:[%s5623_s17 + $0x8] sm:$0xf] }
 0x307   : > { %v4803_v54 = vld [vmem:[%s5623_s17 + $0x44] sm:$0xf0] }
 0x308   : > { %v3739_v56 = vor.u32 %v4803_v54, %v3738_v53  ;;  %v4853_v53 = vld [vmem:[%s5623_s17 + $0x1d4] sm:$0xf0] }
 0x36c   : > { %v902_v1 = vpop.permute.xlu1 %901 }
 0x36d   : > { %v907_v2 = vsel %vm652_vm0, %v759_v0, %v902_v1  ;;  %v3991_v0 = vor.u32 %v4858_v55, %v3988_v57  ;;  %v3995_v1 = vor.u32 %v4867_v59, %v3994_v58  ;;  %v3735_v55 = vor.u32 %v4794_v50, %v3732_v52  ;;  %v4795_v57 = vld [vmem:[%s5623_s17 + $0xc] sm:$0xf]  ;;  %v4194_v59 = vld [vmem:[%s5623_s17 + $0x390] sm:$0xf]  ;;  %v3946_v52 = vld [vmem:[%s5623_s17 + $0x198] sm:$0xf] }
 0x36e   : > { %913 = vst [vmem:[#allocation3] sm:$0xf] %v907_v2  ;;  %v3922_v2 = vld [vmem:[%s5623_s17 + $0x180] sm:$0xf]  ;;  %v3740_v58 = vld [vmem:[%s5623_s17 + $0x48] sm:$0xf0] }
 0x36f   : > { %1841 = vmatpush.bf16.msra.mxu3 %v3991_v0  ;;  %1855 = vmatpush.bf16.msrb.mxu0 %v3995_v1 }
 0x376   : > { %v904_v6 = vpop.permute.xlu0 %903 }
 0x377   : > { %v911_v7 = vsel %vm652_vm0, %v760_v5, %v904_v6  ;;  %v3999_v5 = vor.u32 %v4859_v60, %v3996_v61  ;;  %v3924_v6 = vld [vmem:[%s5623_s17 + $0x1c0] sm:$0xf0]  ;;  %v3743_v60 = vor.u32 %v4795_v57, %v3740_v58  ;;  %v4916_v61 = vld [vmem:[%s5623_s17 + $0x3cc] sm:$0xf0]  ;;  %v3948_v57 = vld [vmem:[%s5623_s17 + $0x1d8] sm:$0xf0] }
 0x378   : > { %914 = vst [vmem:[#allocation3 + $0x4] sm:$0xf] %v911_v7  ;;  %v3930_v7 = vld [vmem:[%s5623_s17 + $0x188] sm:$0xf]  ;;  %v4195_v0 = vor.u32 %v4916_v61, %v4194_v59  ;;  %v3874_v59 = vld [vmem:[%s5623_s17 + $0x110] sm:$0xf] }
 0x379   : > { %1869 = vmatpush.bf16.msra.mxu1 %v3999_v5  ;;  %v4828_v61 = vld [vmem:[%s5623_s17 + $0x114] sm:$0xf] }
 0x37f   : > { %v4785_v8 = vld [vmem:[#allocation3] sm:$0xff] }
 0x380   : > { %995 = vmatmul.bf16.vlgmr.msrb.gmra.mxu1 %v4785_v8  ;;  %v4851_v8 = vld [vmem:[%s5623_s17 + $0x1c4] sm:$0xf0] }
 0x3fd   : > { %v996_v9 = vpop.f32.mrf.mxu1 }
 0x3fe   : > { %v5743_v10 = vadd.f32 %v996_v9, %v5669_v47  ;;  %v1008_v47 = vsub.f32 1.0, %v1007_v15  ;;  %v4843_v9 = vld [vmem:[%s5623_s17 + $0x18c] sm:$0xf]  ;;  %v3923_v15 = vor.u32 %v4850_v3, %v3922_v2  ;;  %v4202_v2 = vld [vmem:[%s5623_s17 + $0x398] sm:$0xf] }
 0x3ff   : > { %v4917_v3 = vld [vmem:[%s5623_s17 + $0x3d4] sm:$0xf0] }
 0x400   : > { %1002 = vadd.xlane.f32.xlu2 %v5743_v10  ;;  %v1009_v44 = vmul.f32 %v5750_v14, %v1008_v47  ;;  %v3927_v47 = vor.u32 %v4842_v4, %v3924_v6  ;;  %v4909_v4 = vld [vmem:[%s5623_s17 + $0x39c] sm:$0xf]  ;;  %v4203_v5 = vor.u32 %v4917_v3, %v4202_v2 }
 0x401   : > { %v4204_v6 = vld [vmem:[%s5623_s17 + $0x3d8] sm:$0xf0] }
 0x402   : > { %v1010_v62 = vadd.f32 %v5750_v14, %v1009_v44  ;;  %1842 = vmatpush.bf16.msra.mxu3 %v3927_v47  ;;  %v3804_v44 = vld [vmem:[%s5623_s17 + $0xc8] sm:$0xf0]  ;;  %v4132_v47 = vld [vmem:[%s5623_s17 + $0x350] sm:$0xf0] }
 0x404   : > { %v5797_v13 = vsel %vm1011_vm4, %v5750_v14, %v1010_v62  ;;  %v4908_v62 = vld [vmem:[%s5623_s17 + $0x394] sm:$0xf] }
 0x405   : > { %v998_v11 = vpop.f32.mrf.mxu1 }
 0x406   : > { %v5747_v12 = vadd.f32 %v998_v11, %v5671_v48  ;;  %v4179_v48 = vor.u32 %v4914_v17, %v4178_v16  ;;  %v3932_v11 = vld [vmem:[%s5623_s17 + $0x1c8] sm:$0xf0]  ;;  %v3931_v16 = vor.u32 %v4851_v8, %v3930_v7  ;;  %1843 = vmatpush.bf16.msra.mxu3 %v3863_v30  ;;  %v4130_v7 = vld [vmem:[%s5623_s17 + $0x310] sm:$0xf] }
 0x407   : > { %v3935_v18 = vor.u32 %v4843_v9, %v3932_v11  ;;  %v4900_v8 = vld [vmem:[%s5623_s17 + $0x34c] sm:$0xf0]  ;;  %v4207_v9 = vor.u32 %v4909_v4, %v4204_v6  ;;  %v4829_v4 = vld [vmem:[%s5623_s17 + $0x11c] sm:$0xf] }
 0x408   : > { %1004 = vadd.xlane.f32.xlu1 %v5747_v12  ;;  %1824 = vmatpush.bf16.msrb.mxu2 %v4179_v48  ;;  %v4131_v11 = vor.u32 %v4900_v8, %v4130_v7  ;;  %v3810_v7 = vld [vmem:[%s5623_s17 + $0x90] sm:$0xf] }
 0x409   : > { %1856 = vmatpush.bf16.msrb.mxu0 %v3931_v16  ;;  %1870 = vmatpush.bf16.msra.mxu1 %v3935_v18  ;;  %v4138_v16 = vld [vmem:[%s5623_s17 + $0x318] sm:$0xf]  ;;  %v4820_v8 = vld [vmem:[%s5623_s17 + $0xcc] sm:$0xf0] }
 0x40a   : > { %1844 = vmatpush.bf16.msra.mxu3 %v3799_v41  ;;  %v4901_v18 = vld [vmem:[%s5623_s17 + $0x354] sm:$0xf0]  ;;  %v4011_v41 = vor.u32 %v4869_v39, %v4010_v38 }
 0x40c   : > { %1825 = vmatpush.bf16.msrb.mxu2 %v4115_v31  ;;  %v4827_v31 = vld [vmem:[%s5623_s17 + $0x10c] sm:$0xf] }
 0x40d   : > { %v3871_v33 = vor.u32 %v4827_v31, %v3868_v32  ;;  %v4076_v31 = vld [vmem:[%s5623_s17 + $0x2d8] sm:$0xf0] }
 0x40e   : > { %1845 = vmatpush.bf16.msra.mxu3 %v3735_v55  ;;  %v3947_v55 = vor.u32 %v4853_v53, %v3946_v52 }
 0x40f   : > { %1871 = vmatpush.bf16.msra.mxu1 %v3871_v33  ;;  %v4002_v33 = vld [vmem:[%s5623_s17 + $0x210] sm:$0xf] }
 0x410   : > { %1826 = vmatpush.bf16.msrb.mxu2 %v4051_v45  ;;  %v3807_v45 = vor.u32 %v4811_v43, %v3804_v44  ;;  %v4003_v36 = vor.u32 %v4868_v34, %v4002_v33  ;;  %v4012_v43 = vld [vmem:[%s5623_s17 + $0x258] sm:$0xf0] }
 0x413   : > { %1872 = vmatpush.bf16.msra.mxu1 %v3807_v45  ;;  %v3938_v45 = vld [vmem:[%s5623_s17 + $0x190] sm:$0xf] }
 0x414   : > { %1827 = vmatpush.bf16.msrb.mxu2 %v3987_v63  ;;  %v4196_v63 = vld [vmem:[%s5623_s17 + $0x3d0] sm:$0xf0]  ;;  %v3939_v50 = vor.u32 %v4852_v46, %v3938_v45 }
 0x415   : > { %v4199_v1 = vor.u32 %v4908_v62, %v4196_v63  ;;  %v3876_v63 = vld [vmem:[%s5623_s17 + $0x150] sm:$0xf0] }
 0x416   : > { %v3879_v2 = vor.u32 %v4828_v61, %v3876_v63  ;;  %v4210_v61 = vld [vmem:[%s5623_s17 + $0x3a0] sm:$0xf]  ;;  %v4910_v63 = vld [vmem:[%s5623_s17 + $0x3a4] sm:$0xf] }
 0x417   : > { %1873 = vmatpush.bf16.msra.mxu1 %v3743_v60  ;;  %1894 = vmatpush.bf16.msrb.mxu3 %v4199_v1  ;;  %v4836_v60 = vld [vmem:[%s5623_s17 + $0x14c] sm:$0xf0]  ;;  %v4837_v1 = vld [vmem:[%s5623_s17 + $0x154] sm:$0xf0] }
 0x418   : > { %1828 = vmatpush.bf16.msrb.mxu2 %v3923_v15  ;;  %v4892_v15 = vld [vmem:[%s5623_s17 + $0x314] sm:$0xf]  ;;  %v3875_v62 = vor.u32 %v4836_v60, %v3874_v59 }
 0x41b   : > { %1922 = vmatpush.bf16.msrb.mxu1 %v4207_v9  ;;  %v4812_v9 = vld [vmem:[%s5623_s17 + $0x94] sm:$0xf] }
 0x41c   : > { %1829 = vmatpush.bf16.msrb.mxu2 %v3859_v26  ;;  %v4068_v26 = vld [vmem:[%s5623_s17 + $0x2d0] sm:$0xf0] }
 0x420   : > { %1830 = vmatpush.bf16.msrb.mxu2 %v3795_v37  ;;  %v4004_v37 = vld [vmem:[%s5623_s17 + $0x250] sm:$0xf0] }
 0x421   : > { %v4007_v40 = vor.u32 %v4860_v35, %v4004_v37 }
 0x424   : > { %1831 = vmatpush.bf16.msrb.mxu2 %v3731_v51  ;;  %v3940_v51 = vld [vmem:[%s5623_s17 + $0x1d0] sm:$0xf0] }
 0x425   : > { %v3943_v54 = vor.u32 %v4844_v49, %v3940_v51  ;;  %v1001_v49 = vld [vmem:[%s5635_s12] sm:$0xf] }
 0x426   : > { %v1049_v53 = vperm.slane %v1001_v49, 0 }
 0x428   : > { %1880 = vmatpush.bf16.msra.mxu2 %v4195_v0  ;;  %v3882_v0 = vld [vmem:[%s5623_s17 + $0x118] sm:$0xf] }
 0x429   : > { %v3883_v3 = vor.u32 %v4837_v1, %v3882_v0  ;;  %v4218_v0 = vld [vmem:[%s5623_s17 + $0x3a8] sm:$0xf] }
 0x42c   : > { %1881 = vmatpush.bf16.msra.mxu2 %v4131_v11 }
 0x473   : > { %v1003_v17 = vpop.xlane.xlu2 %1002 }
 0x474   : > { %v1013_v48 = vmul.f32 %v5797_v13, %v1003_v17  ;;  %v4135_v17 = vor.u32 %v4892_v15, %v4132_v47  ;;  %v3811_v15 = vor.u32 %v4820_v8, %v3810_v7  ;;  %v3812_v47 = vld [vmem:[%s5623_s17 + $0xd0] sm:$0xf0]  ;;  %v4146_v8 = vld [vmem:[%s5623_s17 + $0x320] sm:$0xf] }
 0x476   : > { %v5801_v19 = vsub.f32 %v5743_v10, %v1013_v48  ;;  %v4893_v48 = vld [vmem:[%s5623_s17 + $0x31c] sm:$0xf]  ;;  %1895 = vmatpush.bf16.msrb.mxu3 %v4135_v17  ;;  %v4821_v17 = vld [vmem:[%s5623_s17 + $0xd4] sm:$0xf0] }
 0x478   : > { %v1017_v14 = vmul.f32 %v5801_v19, %v5801_v19 }
 0x47a   : > { %1019 = vadd.xlane.f32.xlu0 %v1017_v14  ;;  %v4140_v14 = vld [vmem:[%s5623_s17 + $0x358] sm:$0xf0] }
 0x47b   : > { %v1005_v20 = vpop.xlane.xlu1 %1004 }
 0x47c   : > { %v1014_v21 = vmul.f32 %v5797_v13, %v1005_v20  ;;  %v4139_v20 = vor.u32 %v4901_v18, %v4138_v16  ;;  %v3818_v16 = vld [vmem:[%s5623_s17 + $0x98] sm:$0xf] }
 0x47e   : > { %v5807_v22 = vsub.f32 %v5747_v12, %v1014_v21  ;;  %v3867_v12 = vor.u32 %v4835_v29, %v3866_v28  ;;  %v4143_v21 = vor.u32 %v4893_v48, %v4140_v14  ;;  %v4885_v28 = vld [vmem:[%s5623_s17 + $0x2d4] sm:$0xf0]  ;;  %v4071_v29 = vor.u32 %v4876_v24, %v4068_v26  ;;  %v3746_v24 = vld [vmem:[%s5623_s17 + $0x10] sm:$0xf] }
 0x47f   : > { %v4075_v30 = vor.u32 %v4885_v28, %v4074_v27  ;;  %v3815_v48 = vor.u32 %v4812_v9, %v3812_v47  ;;  %v3819_v14 = vor.u32 %v4821_v17, %v3818_v16  ;;  %v4796_v27 = vld [vmem:[%s5623_s17 + $0x14] sm:$0xf]  ;;  %v4902_v9 = vld [vmem:[%s5623_s17 + $0x35c] sm:$0xf0]  ;;  %v4894_v47 = vld [vmem:[%s5623_s17 + $0x324] sm:$0xf] }
 0x480   : > { %v1018_v10 = vmul.f32 %v5807_v22, %v5807_v22  ;;  %1857 = vmatpush.bf16.msrb.mxu0 %v3867_v12  ;;  %v4877_v12 = vld [vmem:[%s5623_s17 + $0x29c] sm:$0xf]  ;;  %1923 = vmatpush.bf16.msrb.mxu1 %v4143_v21  ;;  %v3748_v28 = vld [vmem:[%s5623_s17 + $0x50] sm:$0xf0]  ;;  %v4148_v16 = vld [vmem:[%s5623_s17 + $0x360] sm:$0xf0] }
 0x481   : > { %v4079_v32 = vor.u32 %v4877_v12, %v4076_v31  ;;  %1896 = vmatpush.bf16.msrb.mxu3 %v4071_v29  ;;  %v3820_v21 = vld [vmem:[%s5623_s17 + $0xd8] sm:$0xf0]  ;;  %v3754_v29 = vld [vmem:[%s5623_s17 + $0x18] sm:$0xf]  ;;  %v4154_v17 = vld [vmem:[%s5623_s17 + $0x328] sm:$0xf] }
 0x482   : > { %1021 = vadd.xlane.f32.xlu2 %v1018_v10  ;;  %v4066_v10 = vld [vmem:[%s5623_s17 + $0x290] sm:$0xf]  ;;  %v4805_v12 = vld [vmem:[%s5623_s17 + $0x54] sm:$0xf0]  ;;  %v4797_v31 = vld [vmem:[%s5623_s17 + $0x1c] sm:$0xf] }
 0x483   : > { %v4067_v25 = vor.u32 %v4884_v23, %v4066_v10  ;;  %v3755_v33 = vor.u32 %v4805_v12, %v3754_v29  ;;  %v4887_v29 = vld [vmem:[%s5623_s17 + $0x2e4] sm:$0xf0]  ;;  %v4092_v12 = vld [vmem:[%s5623_s17 + $0x2e8] sm:$0xf0] }
 0x484   : > { %1858 = vmatpush.bf16.msrb.mxu0 %v3803_v42  ;;  %v4861_v42 = vld [vmem:[%s5623_s17 + $0x21c] sm:$0xf]  ;;  %1924 = vmatpush.bf16.msrb.mxu1 %v4079_v32 }
 0x485   : > { %1882 = vmatpush.bf16.msra.mxu2 %v4067_v25  ;;  %v4015_v44 = vor.u32 %v4861_v42, %v4012_v43  ;;  %1897 = vmatpush.bf16.msrb.mxu3 %v4007_v40  ;;  %v4804_v25 = vld [vmem:[%s5623_s17 + $0x4c] sm:$0xf0]  ;;  %v3756_v32 = vld [vmem:[%s5623_s17 + $0x58] sm:$0xf0] }
 0x486   : > { %v3747_v26 = vor.u32 %v4804_v25, %v3746_v24  ;;  %v3759_v34 = vor.u32 %v4797_v31, %v3756_v32 }
 0x488   : > { %1859 = vmatpush.bf16.msrb.mxu0 %v3739_v56  ;;  %v4845_v56 = vld [vmem:[%s5623_s17 + $0x19c] sm:$0xf]  ;;  %1925 = vmatpush.bf16.msrb.mxu1 %v4015_v44 }
 0x489   : > { %1883 = vmatpush.bf16.msra.mxu2 %v4003_v36  ;;  %v3951_v58 = vor.u32 %v4845_v56, %v3948_v57  ;;  %1898 = vmatpush.bf16.msrb.mxu3 %v3943_v54  ;;  %v1052_v57 = vperm.slane %v1001_v49, 1 }
 0x48c   : > { %1908 = vmatpush.bf16.msra.mxu0 %v4203_v5  ;;  %v3884_v5 = vld [vmem:[%s5623_s17 + $0x158] sm:$0xf0]  ;;  %1926 = vmatpush.bf16.msrb.mxu1 %v3951_v58 }
 0x48d   : > { %1884 = vmatpush.bf16.msra.mxu2 %v3939_v50  ;;  %v3887_v6 = vor.u32 %v4829_v4, %v3884_v5  ;;  %1899 = vmatpush.bf16.msrb.mxu3 %v3879_v2  ;;  %v4911_v4 = vld [vmem:[%s5623_s17 + $0x3ac] sm:$0xf] }
 0x490   : > { %1909 = vmatpush.bf16.msra.mxu0 %v4139_v20  ;;  %v4813_v20 = vld [vmem:[%s5623_s17 + $0x9c] sm:$0xf]  ;;  %1927 = vmatpush.bf16.msrb.mxu1 %v3887_v6 }
 0x491   : > { %1885 = vmatpush.bf16.msra.mxu2 %v3875_v62  ;;  %v3823_v10 = vor.u32 %v4813_v20, %v3820_v21  ;;  %1900 = vmatpush.bf16.msrb.mxu3 %v3815_v48  ;;  %v4918_v62 = vld [vmem:[%s5623_s17 + $0x3dc] sm:$0xf0]  ;;  %v4895_v48 = vld [vmem:[%s5623_s17 + $0x32c] sm:$0xf]  ;;  %v4147_v20 = vor.u32 %v4902_v9, %v4146_v8  ;;  %v4151_v21 = vor.u32 %v4894_v47, %v4148_v16  ;;  %v4814_v47 = vld [vmem:[%s5623_s17 + $0xa4] sm:$0xf] }
 0x492   : > { %v4211_v6 = vor.u32 %v4918_v62, %v4210_v61  ;;  %v3826_v8 = vld [vmem:[%s5623_s17 + $0xa0] sm:$0xf]  ;;  %v3828_v16 = vld [vmem:[%s5623_s17 + $0xe0] sm:$0xf0] }
 0x493   : > { %v4822_v9 = vld [vmem:[%s5623_s17 + $0xdc] sm:$0xf0] }
 0x494   : > { %1910 = vmatpush.bf16.msra.mxu0 %v4075_v30  ;;  %v3751_v30 = vor.u32 %v4796_v27, %v3748_v28  ;;  %1928 = vmatpush.bf16.msrb.mxu1 %v3823_v10  ;;  %v4082_v10 = vld [vmem:[%s5623_s17 + $0x2a0] sm:$0xf]  ;;  %v4084_v27 = vld [vmem:[%s5623_s17 + $0x2e0] sm:$0xf0]  ;;  %v4090_v28 = vld [vmem:[%s5623_s17 + $0x2a8] sm:$0xf] }
 0x495   : > { %1886 = vmatpush.bf16.msra.mxu2 %v3811_v15 }
 0x496   : > { %1901 = vmatpush.bf16.msrb.mxu3 %v3751_v30  ;;  %v4879_v30 = vld [vmem:[%s5623_s17 + $0x2ac] sm:$0xf] }
 0x498   : > { %1911 = vmatpush.bf16.msra.mxu0 %v4011_v41  ;;  %1929 = vmatpush.bf16.msrb.mxu1 %v3759_v34  ;;  %v4870_v34 = vld [vmem:[%s5623_s17 + $0x25c] sm:$0xf0] }
 0x499   : > { %1887 = vmatpush.bf16.msra.mxu2 %v3747_v26  ;;  %v4878_v26 = vld [vmem:[%s5623_s17 + $0x2a4] sm:$0xf] }
 0x49a   : > { %v4087_v32 = vor.u32 %v4878_v26, %v4084_v27 }
 0x49c   : > { %1912 = vmatpush.bf16.msra.mxu0 %v3947_v55 }
 0x4a0   : > { %1913 = vmatpush.bf16.msra.mxu0 %v3883_v3  ;;  %v4919_v3 = vld [vmem:[%s5623_s17 + $0x3e4] sm:$0xf0] }
 0x4a4   : > { %1914 = vmatpush.bf16.msra.mxu0 %v3819_v14  ;;  %v4156_v14 = vld [vmem:[%s5623_s17 + $0x368] sm:$0xf0] }
 0x4a5   : > { %v4159_v25 = vor.u32 %v4895_v48, %v4156_v14  ;;  %v4815_v48 = vld [vmem:[%s5623_s17 + $0xac] sm:$0xf] }
 0x4a6   : > { %v3836_v14 = vld [vmem:[%s5623_s17 + $0xe8] sm:$0xf0] }
 0x4a7   : > { %v3839_v27 = vor.u32 %v4815_v48, %v3836_v14  ;;  %v4865_v48 = vld [vmem:[%s5623_s17 + $0x23c] sm:$0xf] }
 0x4a8   : > { %1915 = vmatpush.bf16.msra.mxu0 %v3755_v33  ;;  %v4018_v33 = vld [vmem:[%s5623_s17 + $0x220] sm:$0xf]  ;;  %v4044_v14 = vld [vmem:[%s5623_s17 + $0x278] sm:$0xf0] }
 0x4ed   : > { %v1020_v11 = vpop.xlane.xlu0 %1019 }
 0x4ee   : > { %v1023_v18 = vmul.f32 %v1020_v11, %v5797_v13  ;;  %v4219_v11 = vor.u32 %v4919_v3, %v4218_v0  ;;  %v3898_v0 = vld [vmem:[%s5623_s17 + $0x128] sm:$0xf] }
 0x4ef   : > { %v4839_v3 = vld [vmem:[%s5623_s17 + $0x164] sm:$0xf0] }
 0x4f0   : > { %v1025_v23 = vadd.f32 1e-05, %v1023_v18  ;;  %v4903_v18 = vld [vmem:[%s5623_s17 + $0x364] sm:$0xf0] }
 0x4f1   : > { %v4155_v24 = vor.u32 %v4903_v18, %v4154_v17  ;;  %v3834_v17 = vld [vmem:[%s5623_s17 + $0xa8] sm:$0xf] }
 0x4f2   : > { %5167 = vrsqrt.f32 %v1025_v23  ;;  %vm1033_vm6 = vweird.f32 %v1025_v23  ;;  %v4823_v18 = vld [vmem:[%s5623_s17 + $0xe4] sm:$0xf0] }
 0x4f3   : > { %v3835_v26 = vor.u32 %v4823_v18, %v3834_v17  ;;  %v4042_v17 = vld [vmem:[%s5623_s17 + $0x238] sm:$0xf] }
 0x4f4   : > { %v4873_v18 = vld [vmem:[%s5623_s17 + $0x274] sm:$0xf0] }
 0x4f5   : > { %v1022_v35 = vpop.xlane.xlu2 %1021 }
 0x4f6   : > { %v1024_v36 = vmul.f32 %v1022_v35, %v5797_v13  ;;  %v4091_v35 = vor.u32 %v4887_v29, %v4090_v28  ;;  %v3770_v28 = vld [vmem:[%s5623_s17 + $0x28] sm:$0xf] }
 0x4f7   : > { %v4807_v29 = vld [vmem:[%s5623_s17 + $0x64] sm:$0xf0] }
 0x4f8   : > { %v5168_v37 = vpop.eup %5167  ;;  %v1026_v38 = vadd.f32 1e-05, %v1024_v36  ;;  %v4095_v36 = vor.u32 %v4879_v30, %v4092_v12  ;;  %v4799_v30 = vld [vmem:[%s5623_s17 + $0x2c] sm:$0xf] }
 0x4f9   : > { %v1028_v39 = vmul.f32 %v5168_v37, %v1025_v23  ;;  %vm1034_vm5 = vweird.f32 %v5168_v37  ;;  %v4886_v23 = vld [vmem:[%s5623_s17 + $0x2dc] sm:$0xf0]  ;;  %v3772_v12 = vld [vmem:[%s5623_s17 + $0x68] sm:$0xf0] }
 0x4fa   : > { %5169 = vrsqrt.f32 %v1026_v38  ;;  %vm1035_vm7 = vmor %vm1033_vm6, %vm1034_vm5  ;;  %vm1043_vm9 = vweird.f32 %v1026_v38  ;;  %v4083_v31 = vor.u32 %v4886_v23, %v4082_v10  ;;  %v3831_v10 = vor.u32 %v4814_v47, %v3828_v16  ;;  %v4806_v23 = vld [vmem:[%s5623_s17 + $0x5c] sm:$0xf0]  ;;  %v4864_v47 = vld [vmem:[%s5623_s17 + $0x234] sm:$0xf] }
 0x4fb   : > { %v1029_v40 = vmul.f32 %v5168_v37, %v1028_v39  ;;  %v4026_v39 = vld [vmem:[%s5623_s17 + $0x228] sm:$0xf]  ;;  %v4036_v16 = vld [vmem:[%s5623_s17 + $0x270] sm:$0xf0] }
 0x4fd   : > { %v1030_v41 = vmul.f32 0.5, %v1029_v40  ;;  %v4871_v40 = vld [vmem:[%s5623_s17 + $0x264] sm:$0xf0] }
 0x4fe   : > { %v4027_v49 = vor.u32 %v4871_v40, %v4026_v39  ;;  %v4913_v39 = vld [vmem:[%s5623_s17 + $0x3bc] sm:$0xf] }
 0x4ff   : > { %v1031_v42 = vsub.f32 1.5, %v1030_v41  ;;  %v4863_v41 = vld [vmem:[%s5623_s17 + $0x22c] sm:$0xf]  ;;  %v4236_v40 = vld [vmem:[%s5623_s17 + $0x3f8] sm:$0xf0] }
 0x500   : > { %v5170_v43 = vpop.eup %5169 }
 0x501   : > { %v1032_v44 = vmul.f32 %v5168_v37, %v1031_v42  ;;  %v1038_v45 = vmul.f32 %v5170_v43, %v1026_v38  ;;  %vm1044_vm8 = vweird.f32 %v5170_v43  ;;  %v4020_v38 = vld [vmem:[%s5623_s17 + $0x260] sm:$0xf0]  ;;  %v4028_v42 = vld [vmem:[%s5623_s17 + $0x268] sm:$0xf0] }
 0x502   : > { %vm1045_vm10 = vmor %vm1043_vm9, %vm1044_vm8 }
 0x503   : > { %v1039_v46 = vmul.f32 %v5170_v43, %v1038_v45  ;;  %v1036_v50 = vsel %vm1035_vm7, %v5168_v37, %v1032_v44  ;;  %v4862_v37 = vld [vmem:[%s5623_s17 + $0x224] sm:$0xf]  ;;  %v3954_v45 = vld [vmem:[%s5623_s17 + $0x1a0] sm:$0xf] }
 0x504   : > { %v1047_v54 = vmul.f32 %v1036_v50, %v5801_v19  ;;  %v4212_v19 = vld [vmem:[%s5623_s17 + $0x3e0] sm:$0xf0]  ;;  %v4023_v44 = vor.u32 %v4862_v37, %v4020_v38  ;;  %v4031_v50 = vor.u32 %v4863_v41, %v4028_v42  ;;  %v4921_v38 = vld [vmem:[%s5623_s17 + $0x3f4] sm:$0xf0]  ;;  %v3771_v41 = vor.u32 %v4807_v29, %v3770_v28 }
 0x505   : > { %v1040_v51 = vmul.f32 0.5, %v1039_v46  ;;  %v4215_v7 = vor.u32 %v4910_v63, %v4212_v19  ;;  %v4854_v46 = vld [vmem:[%s5623_s17 + $0x1dc] sm:$0xf0]  ;;  %v4830_v63 = vld [vmem:[%s5623_s17 + $0x124] sm:$0xf]  ;;  %v3775_v42 = vor.u32 %v4799_v30, %v3772_v12 }
 0x506   : > { %v1050_v58 = vmul.f32 %v1049_v53, %v1047_v54  ;;  %v4855_v54 = vld [vmem:[%s5623_s17 + $0x1e4] sm:$0xf0]  ;;  %v3892_v19 = vld [vmem:[%s5623_s17 + $0x160] sm:$0xf0]  ;;  %v3978_v28 = vld [vmem:[%s5623_s17 + $0x1b8] sm:$0xf] }
 0x507   : > { %v1041_v52 = vsub.f32 1.5, %v1040_v51  ;;  %v4846_v51 = vld [vmem:[%s5623_s17 + $0x1a4] sm:$0xf]  ;;  %v4857_v29 = vld [vmem:[%s5623_s17 + $0x1f4] sm:$0xf0] }
 0x508   : > { %v5909_v1 = vadd.f32 %v1052_v57, %v1050_v58  ;;  %v4849_v30 = vld [vmem:[%s5623_s17 + $0x1bc] sm:$0xf] }
 0x509   : > { %v1042_v55 = vmul.f32 %v5170_v43, %v1041_v52  ;;  %v3956_v52 = vld [vmem:[%s5623_s17 + $0x1e0] sm:$0xf0]  ;;  %v3980_v12 = vld [vmem:[%s5623_s17 + $0x1f8] sm:$0xf0] }
 0x50a   : > { %v3959_v58 = vor.u32 %v4846_v51, %v3956_v52  ;;  %v4896_v51 = vld [vmem:[%s5623_s17 + $0x334] sm:$0xf] }
 0x50b   : > { %v1046_v56 = vsel %vm1045_vm10, %v5170_v43, %v1042_v55  ;;  %v4019_v43 = vor.u32 %v4870_v34, %v4018_v33  ;;  %v4847_v55 = vld [vmem:[%s5623_s17 + $0x1ac] sm:$0xf]  ;;  %v4912_v33 = vld [vmem:[%s5623_s17 + $0x3b4] sm:$0xf] }
 0x50c   : > { %v1048_v59 = vmul.f32 %v1046_v56, %v5807_v22  ;;  %v4220_v22 = vld [vmem:[%s5623_s17 + $0x3e8] sm:$0xf0]  ;;  %v4228_v34 = vld [vmem:[%s5623_s17 + $0x3f0] sm:$0xf0] }
 0x50d   : > { %v4223_v15 = vor.u32 %v4911_v4, %v4220_v22  ;;  %v3964_v56 = vld [vmem:[%s5623_s17 + $0x1e8] sm:$0xf0]  ;;  %v4164_v52 = vld [vmem:[%s5623_s17 + $0x370] sm:$0xf0] }
 0x50e   : > { %v1051_v60 = vmul.f32 %v1049_v53, %v1048_v59  ;;  %v3962_v53 = vld [vmem:[%s5623_s17 + $0x1a8] sm:$0xf]  ;;  %v3890_v59 = vld [vmem:[%s5623_s17 + $0x120] sm:$0xf]  ;;  %v3967_v62 = vor.u32 %v4847_v55, %v3964_v56  ;;  %v4831_v4 = vld [vmem:[%s5623_s17 + $0x12c] sm:$0xf] }
 0x50f   : > { %v3963_v61 = vor.u32 %v4855_v54, %v3962_v53  ;;  %v3900_v22 = vld [vmem:[%s5623_s17 + $0x168] sm:$0xf0]  ;;  %v4170_v53 = vld [vmem:[%s5623_s17 + $0x338] sm:$0xf]  ;;  %v4897_v55 = vld [vmem:[%s5623_s17 + $0x33c] sm:$0xf] }
 0x510   : > { %v5911_v2 = vadd.f32 %v1052_v57, %v1051_v60  ;;  %v3955_v57 = vor.u32 %v4854_v46, %v3954_v45  ;;  %v4838_v60 = vld [vmem:[%s5623_s17 + $0x15c] sm:$0xf0]  ;;  %v4162_v45 = vld [vmem:[%s5623_s17 + $0x330] sm:$0xf]  ;;  %v4905_v54 = vld [vmem:[%s5623_s17 + $0x374] sm:$0xf0] }
 0x511   : > { %v4904_v46 = vld [vmem:[%s5623_s17 + $0x36c] sm:$0xf0]  ;;  %v4172_v56 = vld [vmem:[%s5623_s17 + $0x378] sm:$0xf0] }
 0x512   : > { %v5918_v5 = vpack.c.bf16 %v5911_v2, %v5909_v1 }
 0x514   : > { %1832 = vmatmul.bf16.vlgmr.msrb.gmra.mxu2 %v5918_v5  ;;  %1846 = vmatmul.bf16.vlgmr.msra.gmra.mxu3 %v5918_v5 }
 0x515   : > { %1860 = vmatmul.bf16.vlgmr.msrb.gmra.mxu0 %v5918_v5  ;;  %1874 = vmatmul.bf16.vlgmr.msra.gmra.mxu1 %v5918_v5 }
 0x516   : > { %1936 = vmatpush.bf16.msrb.mxu2 %v4211_v6  ;;  %1950 = vmatpush.bf16.msra.mxu3 %v4215_v7  ;;  %v3891_v6 = vor.u32 %v4838_v60, %v3890_v59  ;;  %v3895_v7 = vor.u32 %v4830_v63, %v3892_v19  ;;  %v4098_v59 = vld [vmem:[%s5623_s17 + $0x2b0] sm:$0xf]  ;;  %v4880_v63 = vld [vmem:[%s5623_s17 + $0x2b4] sm:$0xf] }
 0x517   : > { %1964 = vmatpush.bf16.msrb.mxu0 %v4219_v11  ;;  %1978 = vmatpush.bf16.msra.mxu1 %v4223_v15  ;;  %v3899_v11 = vor.u32 %v4839_v3, %v3898_v0  ;;  %v3903_v15 = vor.u32 %v4831_v4, %v3900_v22  ;;  %v4888_v60 = vld [vmem:[%s5623_s17 + $0x2ec] sm:$0xf0]  ;;  %v4100_v19 = vld [vmem:[%s5623_s17 + $0x2f0] sm:$0xf0]  ;;  %v4106_v0 = vld [vmem:[%s5623_s17 + $0x2b8] sm:$0xf] }
 0x518   : > { %v4889_v3 = vld [vmem:[%s5623_s17 + $0x2f4] sm:$0xf0]  ;;  %v4881_v4 = vld [vmem:[%s5623_s17 + $0x2bc] sm:$0xf] }
 0x519   : > { %v4108_v22 = vld [vmem:[%s5623_s17 + $0x2f8] sm:$0xf0] }
 0x51a   : > { %1937 = vmatpush.bf16.msrb.mxu2 %v4147_v20  ;;  %1951 = vmatpush.bf16.msra.mxu3 %v4151_v21  ;;  %v3762_v20 = vld [vmem:[%s5623_s17 + $0x20] sm:$0xf]  ;;  %v3827_v21 = vor.u32 %v4822_v9, %v3826_v8  ;;  %v4034_v8 = vld [vmem:[%s5623_s17 + $0x230] sm:$0xf] }
 0x51b   : > { %1965 = vmatpush.bf16.msrb.mxu0 %v4155_v24  ;;  %1979 = vmatpush.bf16.msra.mxu1 %v4159_v25  ;;  %v4798_v24 = vld [vmem:[%s5623_s17 + $0x24] sm:$0xf]  ;;  %v4872_v9 = vld [vmem:[%s5623_s17 + $0x26c] sm:$0xf0] }
 0x51c   : > { %v3764_v25 = vld [vmem:[%s5623_s17 + $0x60] sm:$0xf0] }
 0x51d   : > { %v3767_v37 = vor.u32 %v4798_v24, %v3764_v25  ;;  %v4043_v24 = vor.u32 %v4873_v18, %v4042_v17  ;;  %v4047_v25 = vor.u32 %v4865_v48, %v4044_v14  ;;  %v4944_v17 = vld [vmem:[%s5625_s16 + $0xb0] sm:$0xff] }
 0x51e   : > { %1938 = vmatpush.bf16.msrb.mxu2 %v4083_v31  ;;  %1952 = vmatpush.bf16.msra.mxu3 %v4087_v32  ;;  %v4226_v31 = vld [vmem:[%s5623_s17 + $0x3b0] sm:$0xf] }
 0x51f   : > { %1966 = vmatpush.bf16.msrb.mxu0 %v4091_v35  ;;  %1980 = vmatpush.bf16.msra.mxu1 %v4095_v36  ;;  %v4920_v32 = vld [vmem:[%s5623_s17 + $0x3ec] sm:$0xf0]  ;;  %v4234_v35 = vld [vmem:[%s5623_s17 + $0x3b8] sm:$0xf]  ;;  %v3763_v36 = vor.u32 %v4806_v23, %v3762_v20  ;;  %v4035_v20 = vor.u32 %v4872_v9, %v4034_v8 }
 0x520   : > { %v4856_v23 = vld [vmem:[%s5623_s17 + $0x1ec] sm:$0xf0] }
 0x521   : > { %v4952_v18 = vld [vmem:[%s5625_s16 + $0xf0] sm:$0xff] }
 0x522   : > { %1939 = vmatpush.bf16.msrb.mxu2 %v4019_v43  ;;  %1953 = vmatpush.bf16.msra.mxu3 %v4023_v44  ;;  %v4227_v43 = vor.u32 %v4920_v32, %v4226_v31  ;;  %v4231_v44 = vor.u32 %v4912_v33, %v4228_v34  ;;  %v3906_v33 = vld [vmem:[%s5623_s17 + $0x130] sm:$0xf] }
 0x523   : > { %1967 = vmatpush.bf16.msrb.mxu0 %v4027_v49  ;;  %1981 = vmatpush.bf16.msra.mxu1 %v4031_v50  ;;  %v4235_v49 = vor.u32 %v4921_v38, %v4234_v35  ;;  %v4239_v50 = vor.u32 %v4913_v39, %v4236_v40  ;;  %v4840_v34 = vld [vmem:[%s5623_s17 + $0x16c] sm:$0xf0]  ;;  %v3979_v35 = vor.u32 %v4857_v29, %v3978_v28  ;;  %v3908_v38 = vld [vmem:[%s5623_s17 + $0x170] sm:$0xf0]  ;;  %v3914_v39 = vld [vmem:[%s5623_s17 + $0x138] sm:$0xf] }
 0x524   : > { %1888 = vmatmul.bf16.vlgmr.msra.gmra.mxu2 %v5918_v5  ;;  %1902 = vmatmul.bf16.vlgmr.msrb.gmra.mxu3 %v5918_v5  ;;  %v4841_v40 = vld [vmem:[%s5623_s17 + $0x174] sm:$0xf0]  ;;  %v4928_v48 = vld [vmem:[%s5625_s16 + $0x30] sm:$0xff] }
 0x525   : > { %1916 = vmatmul.bf16.vlgmr.msra.gmra.mxu0 %v5918_v5  ;;  %1930 = vmatmul.bf16.vlgmr.msrb.gmra.mxu1 %v5918_v5  ;;  %v4936_v14 = vld [vmem:[%s5625_s16 + $0x70] sm:$0xff]  ;;  %v4949_v28 = vld [vmem:[%s5625_s16 + $0xd8] sm:$0xff] }
 0x526   : > { %1940 = vmatpush.bf16.msrb.mxu2 %v3955_v57  ;;  %1954 = vmatpush.bf16.msra.mxu3 %v3959_v58  ;;  %v4163_v57 = vor.u32 %v4904_v46, %v4162_v45  ;;  %v4167_v58 = vor.u32 %v4896_v51, %v4164_v52  ;;  %v3842_v45 = vld [vmem:[%s5623_s17 + $0xb0] sm:$0xf]  ;;  %v4816_v51 = vld [vmem:[%s5623_s17 + $0xb4] sm:$0xf]  ;;  %v4925_v29 = vld [vmem:[%s5625_s16 + $0x18] sm:$0xff] }
 0x527   : > { %1968 = vmatpush.bf16.msrb.mxu0 %v3963_v61  ;;  %1982 = vmatpush.bf16.msra.mxu1 %v3967_v62  ;;  %v4171_v61 = vor.u32 %v4905_v54, %v4170_v53  ;;  %v4175_v62 = vor.u32 %v4897_v55, %v4172_v56  ;;  %v4824_v46 = vld [vmem:[%s5623_s17 + $0xec] sm:$0xf0]  ;;  %v3844_v52 = vld [vmem:[%s5623_s17 + $0xf0] sm:$0xf0]  ;;  %v3850_v53 = vld [vmem:[%s5623_s17 + $0xb8] sm:$0xf] }
 0x528   : > { %v4825_v54 = vld [vmem:[%s5623_s17 + $0xf4] sm:$0xf0]  ;;  %v4817_v55 = vld [vmem:[%s5623_s17 + $0xbc] sm:$0xf] }
 0x529   : > { %v3852_v56 = vld [vmem:[%s5623_s17 + $0xf8] sm:$0xf0] }
 0x52a   : > { %1941 = vmatpush.bf16.msrb.mxu2 %v3891_v6  ;;  %1955 = vmatpush.bf16.msra.mxu3 %v3895_v7  ;;  %v4099_v6 = vor.u32 %v4888_v60, %v4098_v59  ;;  %v4103_v7 = vor.u32 %v4880_v63, %v4100_v19  ;;  %v3778_v59 = vld [vmem:[%s5623_s17 + $0x30] sm:$0xf]  ;;  %v4800_v63 = vld [vmem:[%s5623_s17 + $0x34] sm:$0xf] }
 0x52b   : > { %1969 = vmatpush.bf16.msrb.mxu0 %v3899_v11  ;;  %1983 = vmatpush.bf16.msra.mxu1 %v3903_v15  ;;  %v4107_v11 = vor.u32 %v4889_v3, %v4106_v0  ;;  %v4111_v15 = vor.u32 %v4881_v4, %v4108_v22  ;;  %v4808_v60 = vld [vmem:[%s5623_s17 + $0x6c] sm:$0xf0]  ;;  %v3780_v19 = vld [vmem:[%s5623_s17 + $0x70] sm:$0xf0]  ;;  %v3786_v0 = vld [vmem:[%s5623_s17 + $0x38] sm:$0xf] }
 0x52c   : > { %v4809_v3 = vld [vmem:[%s5623_s17 + $0x74] sm:$0xf0]  ;;  %v4801_v4 = vld [vmem:[%s5623_s17 + $0x3c] sm:$0xf] }
 0x52d   : > { %v3788_v22 = vld [vmem:[%s5623_s17 + $0x78] sm:$0xf0]  ;;  %v3787_v8 = vor.u32 %v4809_v3, %v3786_v0  ;;  %v4980_v0 = vld [vmem:[%s5625_s16 + $0x1d0] sm:$0xff] }
 0x52e   : > { %1942 = vmatpush.bf16.msrb.mxu2 %v3827_v21  ;;  %1956 = vmatpush.bf16.msra.mxu3 %v3831_v10  ;;  %v4039_v21 = vor.u32 %v4864_v47, %v4036_v16  ;;  %v3970_v10 = vld [vmem:[%s5623_s17 + $0x1b0] sm:$0xf]  ;;  %v3791_v9 = vor.u32 %v4801_v4, %v3788_v22  ;;  %v4929_v47 = vld [vmem:[%s5625_s16 + $0x38] sm:$0xff]  ;;  %v4971_v22 = vld [vmem:[%s5625_s16 + $0x188] sm:$0xff] }
 0x52f   : > { %1970 = vmatpush.bf16.msrb.mxu0 %v3835_v26  ;;  %1984 = vmatpush.bf16.msra.mxu1 %v3839_v27  ;;  %v4848_v26 = vld [vmem:[%s5623_s17 + $0x1b4] sm:$0xf]  ;;  %v3971_v31 = vor.u32 %v4856_v23, %v3970_v10  ;;  %v4937_v16 = vld [vmem:[%s5625_s16 + $0x78] sm:$0xff]  ;;  %v4927_v10 = vld [vmem:[%s5625_s16 + $0x28] sm:$0xff] }
 0x530   : > { %v3972_v27 = vld [vmem:[%s5623_s17 + $0x1f0] sm:$0xf0]  ;;  %v4935_v23 = vld [vmem:[%s5625_s16 + $0x68] sm:$0xff] }
 0x531   : > { %v3975_v32 = vor.u32 %v4848_v26, %v3972_v27  ;;  %v4934_v26 = vld [vmem:[%s5625_s16 + $0x60] sm:$0xff]  ;;  %v4941_v27 = vld [vmem:[%s5625_s16 + $0x98] sm:$0xff]  ;;  %v4956_v3 = vld [vmem:[%s5625_s16 + $0x110] sm:$0xff] }
 0x532   : > { %1943 = vmatpush.bf16.msrb.mxu2 %v3763_v36  ;;  %1957 = vmatpush.bf16.msra.mxu3 %v3767_v37  ;;  %v3983_v36 = vor.u32 %v4849_v30, %v3980_v12  ;;  %v4832_v37 = vld [vmem:[%s5623_s17 + $0x134] sm:$0xf]  ;;  %v4933_v30 = vld [vmem:[%s5625_s16 + $0x58] sm:$0xff] }
 0x533   : > { %1971 = vmatpush.bf16.msrb.mxu0 %v3771_v41  ;;  %1985 = vmatpush.bf16.msra.mxu1 %v3775_v42  ;;  %v4833_v41 = vld [vmem:[%s5623_s17 + $0x13c] sm:$0xf]  ;;  %v4940_v12 = vld [vmem:[%s5625_s16 + $0x90] sm:$0xff] }
 0x534   : > { %v3916_v42 = vld [vmem:[%s5623_s17 + $0x178] sm:$0xf0]  ;;  %v4964_v4 = vld [vmem:[%s5625_s16 + $0x150] sm:$0xff] }
 0x535   : > { %1944 = vmatmul.bf16.vlgmr.msrb.gmra.mxu2 %v5918_v5  ;;  %1958 = vmatmul.bf16.vlgmr.msra.gmra.mxu3 %v5918_v5 }
 0x536   : > { %1992 = vmatpush.bf16.msra.mxu2 %v4227_v43  ;;  %2006 = vmatpush.bf16.msrb.mxu3 %v4231_v44  ;;  %v3907_v43 = vor.u32 %v4840_v34, %v3906_v33  ;;  %v3911_v44 = vor.u32 %v4832_v37, %v3908_v38  ;;  %v4932_v33 = vld [vmem:[%s5625_s16 + $0x50] sm:$0xff]  ;;  %v4939_v34 = vld [vmem:[%s5625_s16 + $0x88] sm:$0xff]  ;;  %v4938_v38 = vld [vmem:[%s5625_s16 + $0x80] sm:$0xff] }
 0x537   : > { %2020 = vmatpush.bf16.msra.mxu0 %v4235_v49  ;;  %2034 = vmatpush.bf16.msrb.mxu1 %v4239_v50  ;;  %v3915_v49 = vor.u32 %v4841_v40, %v3914_v39  ;;  %v3919_v50 = vor.u32 %v4833_v41, %v3916_v42  ;;  %v4931_v37 = vld [vmem:[%s5625_s16 + $0x48] sm:$0xff]  ;;  %v4946_v39 = vld [vmem:[%s5625_s16 + $0xc0] sm:$0xff]  ;;  %v4977_v40 = vld [vmem:[%s5625_s16 + $0x1b8] sm:$0xff] }
 0x538   : > { %1972 = vmatmul.bf16.vlgmr.msrb.gmra.mxu0 %v5918_v5  ;;  %1986 = vmatmul.bf16.vlgmr.msra.gmra.mxu1 %v5918_v5  ;;  %v4985_v41 = vld [vmem:[%s5625_s16 + $0x1f8] sm:$0xff]  ;;  %v4922_v42 = vld [vmem:[%s5625_s16] sm:$0xff] }
 0x53a   : > { %1993 = vmatpush.bf16.msra.mxu2 %v4163_v57  ;;  %2007 = vmatpush.bf16.msrb.mxu3 %v4167_v58  ;;  %v3843_v57 = vor.u32 %v4824_v46, %v3842_v45  ;;  %v3847_v58 = vor.u32 %v4816_v51, %v3844_v52  ;;  %v4969_v45 = vld [vmem:[%s5625_s16 + $0x178] sm:$0xff]  ;;  %v4976_v46 = vld [vmem:[%s5625_s16 + $0x1b0] sm:$0xff]  ;;  %v4975_v52 = vld [vmem:[%s5625_s16 + $0x1a8] sm:$0xff] }
 0x53b   : > { %2021 = vmatpush.bf16.msra.mxu0 %v4171_v61  ;;  %2035 = vmatpush.bf16.msrb.mxu1 %v4175_v62  ;;  %v3851_v61 = vor.u32 %v4825_v54, %v3850_v53  ;;  %v3855_v62 = vor.u32 %v4817_v55, %v3852_v56  ;;  %v4968_v51 = vld [vmem:[%s5625_s16 + $0x170] sm:$0xff]  ;;  %v4983_v53 = vld [vmem:[%s5625_s16 + $0x1e8] sm:$0xff]  ;;  %v4974_v56 = vld [vmem:[%s5625_s16 + $0x1a0] sm:$0xff] }
 0x53c   : > { %v4959_v54 = vld [vmem:[%s5625_s16 + $0x128] sm:$0xff] }
 0x53d   : > { %v4967_v55 = vld [vmem:[%s5625_s16 + $0x168] sm:$0xff] }
 0x53e   : > { %1994 = vmatpush.bf16.msra.mxu2 %v4099_v6  ;;  %2008 = vmatpush.bf16.msrb.mxu3 %v4103_v7  ;;  %v3779_v6 = vor.u32 %v4808_v60, %v3778_v59  ;;  %v3783_v7 = vor.u32 %v4800_v63, %v3780_v19  ;;  %v4966_v59 = vld [vmem:[%s5625_s16 + $0x160] sm:$0xff]  ;;  %v4973_v60 = vld [vmem:[%s5625_s16 + $0x198] sm:$0xff]  ;;  %v4972_v19 = vld [vmem:[%s5625_s16 + $0x190] sm:$0xff] }
 0x53f   : > { %2022 = vmatpush.bf16.msra.mxu0 %v4107_v11  ;;  %2036 = vmatpush.bf16.msrb.mxu1 %v4111_v15  ;;  %v4945_v11 = vld [vmem:[%s5625_s16 + $0xb8] sm:$0xff] }
 0x540   : > { %v4953_v15 = vld [vmem:[%s5625_s16 + $0xf8] sm:$0xff] }
 0x541   : > { %v4965_v63 = vld [vmem:[%s5625_s16 + $0x158] sm:$0xff] }
 0x542   : > { %1995 = vmatpush.bf16.msra.mxu2 %v4035_v20  ;;  %2009 = vmatpush.bf16.msrb.mxu3 %v4039_v21  ;;  %v4943_v20 = vld [vmem:[%s5625_s16 + $0xa8] sm:$0xff] }
 0x543   : > { %2023 = vmatpush.bf16.msra.mxu0 %v4043_v24  ;;  %2037 = vmatpush.bf16.msrb.mxu1 %v4047_v25  ;;  %v4951_v21 = vld [vmem:[%s5625_s16 + $0xe8] sm:$0xff]  ;;  %v4950_v24 = vld [vmem:[%s5625_s16 + $0xe0] sm:$0xff] }
 0x544   : > { %v4926_v25 = vld [vmem:[%s5625_s16 + $0x20] sm:$0xff] }
 0x546   : > { %1996 = vmatpush.bf16.msra.mxu2 %v3971_v31  ;;  %2010 = vmatpush.bf16.msrb.mxu3 %v3975_v32  ;;  %v4948_v31 = vld [vmem:[%s5625_s16 + $0xd0] sm:$0xff] }
 0x547   : > { %2024 = vmatpush.bf16.msra.mxu0 %v3979_v35  ;;  %2038 = vmatpush.bf16.msrb.mxu1 %v3983_v36  ;;  %v4924_v32 = vld [vmem:[%s5625_s16 + $0x10] sm:$0xff]  ;;  %v4947_v35 = vld [vmem:[%s5625_s16 + $0xc8] sm:$0xff] }
 0x548   : > { %v4923_v36 = vld [vmem:[%s5625_s16 + $0x8] sm:$0xff] }
 0x54a   : > { %1997 = vmatpush.bf16.msra.mxu2 %v3907_v43  ;;  %2011 = vmatpush.bf16.msrb.mxu3 %v3911_v44  ;;  %v4930_v43 = vld [vmem:[%s5625_s16 + $0x40] sm:$0xff]  ;;  %v4961_v44 = vld [vmem:[%s5625_s16 + $0x138] sm:$0xff] }
 0x54b   : > { %2025 = vmatpush.bf16.msra.mxu0 %v3915_v49  ;;  %2039 = vmatpush.bf16.msrb.mxu1 %v3919_v50  ;;  %v4984_v49 = vld [vmem:[%s5625_s16 + $0x1f0] sm:$0xff] }
 0x54c   : > { %v4960_v50 = vld [vmem:[%s5625_s16 + $0x130] sm:$0xff] }
 0x54e   : > { %1998 = vmatpush.bf16.msra.mxu2 %v3843_v57  ;;  %2012 = vmatpush.bf16.msrb.mxu3 %v3847_v58  ;;  %v4982_v57 = vld [vmem:[%s5625_s16 + $0x1e0] sm:$0xff] }
 0x54f   : > { %2026 = vmatpush.bf16.msra.mxu0 %v3851_v61  ;;  %2040 = vmatpush.bf16.msrb.mxu1 %v3855_v62  ;;  %v4958_v58 = vld [vmem:[%s5625_s16 + $0x120] sm:$0xff]  ;;  %v4981_v61 = vld [vmem:[%s5625_s16 + $0x1d8] sm:$0xff] }
 0x550   : > { %v4957_v62 = vld [vmem:[%s5625_s16 + $0x118] sm:$0xff] }
 0x552   : > { %1999 = vmatpush.bf16.msra.mxu2 %v3779_v6  ;;  %2013 = vmatpush.bf16.msrb.mxu3 %v3783_v7  ;;  %v4979_v6 = vld [vmem:[%s5625_s16 + $0x1c8] sm:$0xff] }
 0x553   : > { %2027 = vmatpush.bf16.msra.mxu0 %v3787_v8  ;;  %2041 = vmatpush.bf16.msrb.mxu1 %v3791_v9  ;;  %v4955_v7 = vld [vmem:[%s5625_s16 + $0x108] sm:$0xff]  ;;  %v4970_v9 = vld [vmem:[%s5625_s16 + $0x180] sm:$0xff] }
 0x554   : > { %v4963_v8 = vld [vmem:[%s5625_s16 + $0x148] sm:$0xff] }
 0x555   : > { %2000 = vmatmul.bf16.vlgmr.msra.gmra.mxu2 %v5918_v5  ;;  %2014 = vmatmul.bf16.vlgmr.msrb.gmra.mxu3 %v5918_v5 }
 0x556   : > { %2028 = vmatmul.bf16.vlgmr.msra.gmra.mxu0 %v5918_v5  ;;  %2042 = vmatmul.bf16.vlgmr.msrb.gmra.mxu1 %v5918_v5  ;;  %v4942_v5 = vld [vmem:[%s5625_s16 + $0xa0] sm:$0xff] }
 0x557   : > { %3148 = vmatpush.bf16.msrb.mxu0 %v4945_v11  ;;  %3162 = vmatpush.bf16.msra.mxu1 %v4953_v15  ;;  %v4978_v11 = vld [vmem:[%s5625_s16 + $0x1c0] sm:$0xff] }
 0x558   : > { %3120 = vmatpush.bf16.msrb.mxu2 %v4929_v47  ;;  %3134 = vmatpush.bf16.msra.mxu3 %v4937_v16  ;;  %v4954_v15 = vld [vmem:[%s5625_s16 + $0x100] sm:$0xff] }
 0x559   : > { %v4962_v47 = vld [vmem:[%s5625_s16 + $0x140] sm:$0xff] }
 0x55b   : > { %3149 = vmatpush.bf16.msrb.mxu0 %v4944_v17  ;;  %3163 = vmatpush.bf16.msra.mxu1 %v4952_v18 }
 0x55c   : > { %3121 = vmatpush.bf16.msrb.mxu2 %v4928_v48  ;;  %3135 = vmatpush.bf16.msra.mxu3 %v4936_v14 }
 0x55f   : > { %3150 = vmatpush.bf16.msrb.mxu0 %v4943_v20  ;;  %3164 = vmatpush.bf16.msra.mxu1 %v4951_v21 }
 0x560   : > { %3122 = vmatpush.bf16.msrb.mxu2 %v4927_v10  ;;  %3136 = vmatpush.bf16.msra.mxu3 %v4935_v23 }
 0x563   : > { %3151 = vmatpush.bf16.msrb.mxu0 %v4942_v5  ;;  %3165 = vmatpush.bf16.msra.mxu1 %v4950_v24  ;;  %v5009_v24 = vld [vmem:[%s5625_s16 + $0x2b8] sm:$0xff] }
 0x564   : > { %3123 = vmatpush.bf16.msrb.mxu2 %v4926_v25  ;;  %3137 = vmatpush.bf16.msra.mxu3 %v4934_v26  ;;  %v5017_v25 = vld [vmem:[%s5625_s16 + $0x2f8] sm:$0xff] }
 0x567   : > { %3152 = vmatpush.bf16.msrb.mxu0 %v4941_v27  ;;  %3166 = vmatpush.bf16.msra.mxu1 %v4949_v28 }
 0x568   : > { %3124 = vmatpush.bf16.msrb.mxu2 %v4925_v29  ;;  %3138 = vmatpush.bf16.msra.mxu3 %v4933_v30 }
 0x56b   : > { %3153 = vmatpush.bf16.msrb.mxu0 %v4940_v12  ;;  %3167 = vmatpush.bf16.msra.mxu1 %v4948_v31 }
 0x56c   : > { %3125 = vmatpush.bf16.msrb.mxu2 %v4924_v32  ;;  %3139 = vmatpush.bf16.msra.mxu3 %v4932_v33  ;;  %v5008_v33 = vld [vmem:[%s5625_s16 + $0x2b0] sm:$0xff] }
 0x56f   : > { %3154 = vmatpush.bf16.msrb.mxu0 %v4939_v34  ;;  %3168 = vmatpush.bf16.msra.mxu1 %v4947_v35  ;;  %v5016_v34 = vld [vmem:[%s5625_s16 + $0x2f0] sm:$0xff] }
 0x570   : > { %3126 = vmatpush.bf16.msrb.mxu2 %v4923_v36  ;;  %3140 = vmatpush.bf16.msra.mxu3 %v4931_v37 }
 0x573   : > { %3155 = vmatpush.bf16.msrb.mxu0 %v4938_v38  ;;  %3169 = vmatpush.bf16.msra.mxu1 %v4946_v39  ;;  %v4993_v39 = vld [vmem:[%s5625_s16 + $0x238] sm:$0xff] }
 0x574   : > { %3127 = vmatpush.bf16.msrb.mxu2 %v4922_v42  ;;  %3141 = vmatpush.bf16.msra.mxu3 %v4930_v43  ;;  %v5015_v42 = vld [vmem:[%s5625_s16 + $0x2e8] sm:$0xff]  ;;  %v4992_v43 = vld [vmem:[%s5625_s16 + $0x230] sm:$0xff] }
 0x577   : > { %3204 = vmatpush.bf16.msra.mxu0 %v4977_v40  ;;  %3218 = vmatpush.bf16.msrb.mxu1 %v4985_v41  ;;  %v5001_v40 = vld [vmem:[%s5625_s16 + $0x278] sm:$0xff]  ;;  %v5007_v41 = vld [vmem:[%s5625_s16 + $0x2a8] sm:$0xff] }
 0x578   : > { %3176 = vmatpush.bf16.msra.mxu2 %v4961_v44  ;;  %3190 = vmatpush.bf16.msrb.mxu3 %v4969_v45  ;;  %v5000_v44 = vld [vmem:[%s5625_s16 + $0x270] sm:$0xff] }
 0x57b   : > { %3205 = vmatpush.bf16.msra.mxu0 %v4976_v46  ;;  %3219 = vmatpush.bf16.msrb.mxu1 %v4984_v49  ;;  %v5006_v49 = vld [vmem:[%s5625_s16 + $0x2a0] sm:$0xff] }
 0x57c   : > { %3177 = vmatpush.bf16.msra.mxu2 %v4960_v50  ;;  %3191 = vmatpush.bf16.msrb.mxu3 %v4968_v51  ;;  %v5014_v50 = vld [vmem:[%s5625_s16 + $0x2e0] sm:$0xff] }
 0x57f   : > { %3206 = vmatpush.bf16.msra.mxu0 %v4975_v52  ;;  %3220 = vmatpush.bf16.msrb.mxu1 %v4983_v53  ;;  %v4991_v53 = vld [vmem:[%s5625_s16 + $0x228] sm:$0xff] }
 0x580   : > { %3178 = vmatpush.bf16.msra.mxu2 %v4959_v54  ;;  %3192 = vmatpush.bf16.msrb.mxu3 %v4967_v55  ;;  %v4999_v54 = vld [vmem:[%s5625_s16 + $0x268] sm:$0xff] }
 0x583   : > { %3207 = vmatpush.bf16.msra.mxu0 %v4974_v56  ;;  %3221 = vmatpush.bf16.msrb.mxu1 %v4982_v57 }
 0x584   : > { %3179 = vmatpush.bf16.msra.mxu2 %v4958_v58  ;;  %3193 = vmatpush.bf16.msrb.mxu3 %v4966_v59  ;;  %v5005_v59 = vld [vmem:[%s5625_s16 + $0x298] sm:$0xff] }
 0x587   : > { %3208 = vmatpush.bf16.msra.mxu0 %v4973_v60  ;;  %3222 = vmatpush.bf16.msrb.mxu1 %v4981_v61  ;;  %v5013_v60 = vld [vmem:[%s5625_s16 + $0x2d8] sm:$0xff] }
 0x588   : > { %3180 = vmatpush.bf16.msra.mxu2 %v4957_v62  ;;  %3194 = vmatpush.bf16.msrb.mxu3 %v4965_v63  ;;  %v4990_v63 = vld [vmem:[%s5625_s16 + $0x220] sm:$0xff] }
 0x58b   : > { %3209 = vmatpush.bf16.msra.mxu0 %v4972_v19  ;;  %3223 = vmatpush.bf16.msrb.mxu1 %v4980_v0  ;;  %v4998_v19 = vld [vmem:[%s5625_s16 + $0x260] sm:$0xff] }
 0x58c   : > { %3181 = vmatpush.bf16.msra.mxu2 %v4956_v3  ;;  %3195 = vmatpush.bf16.msrb.mxu3 %v4964_v4 }
 0x58f   : > { %3210 = vmatpush.bf16.msra.mxu0 %v4971_v22  ;;  %3224 = vmatpush.bf16.msrb.mxu1 %v4979_v6 }
 0x590   : > { %3182 = vmatpush.bf16.msra.mxu2 %v4955_v7  ;;  %3196 = vmatpush.bf16.msrb.mxu3 %v4963_v8  ;;  %v5004_v8 = vld [vmem:[%s5625_s16 + $0x290] sm:$0xff] }
 0x592   : > { %v1861_v16 = vpop.f32.mrf.mxu0  ;;  %v1875_v17 = vpop.f32.mrf.mxu1 }
 0x593   : > { %3211 = vmatpush.bf16.msra.mxu0 %v4970_v9  ;;  %3225 = vmatpush.bf16.msrb.mxu1 %v4978_v11  ;;  %v2050_v21 = vmax.f32 %v1861_v16, 0.0  ;;  %v2051_v10 = vmax.f32 %v1875_v17, 0.0  ;;  %v5012_v9 = vld [vmem:[%s5625_s16 + $0x2d0] sm:$0xff]  ;;  %v4997_v16 = vld [vmem:[%s5625_s16 + $0x258] sm:$0xff] }
 0x594   : > { %3183 = vmatpush.bf16.msra.mxu2 %v4954_v15  ;;  %3197 = vmatpush.bf16.msrb.mxu3 %v4962_v47  ;;  %v4989_v47 = vld [vmem:[%s5625_s16 + $0x218] sm:$0xff] }
 0x597   : > { %v1833_v18 = vpop.f32.mrf.mxu2  ;;  %v1847_v48 = vpop.f32.mrf.mxu3 }
 0x598   : > { %v2048_v30 = vmax.f32 %v1833_v18, 0.0  ;;  %v2049_v12 = vmax.f32 %v1847_v48, 0.0  ;;  %v5003_v48 = vld [vmem:[%s5625_s16 + $0x288] sm:$0xff] }
 0x59a   : > { %v1863_v14 = vpop.f32.mrf.mxu0  ;;  %v1877_v20 = vpop.f32.mrf.mxu1 }
 0x59b   : > { %v2066_v23 = vmax.f32 %v1863_v14, 0.0  ;;  %v2067_v5 = vmax.f32 %v1877_v20, 0.0  ;;  %v5011_v14 = vld [vmem:[%s5625_s16 + $0x2c8] sm:$0xff]  ;;  %v4988_v20 = vld [vmem:[%s5625_s16 + $0x210] sm:$0xff] }
 0x59d   : > { %v2082_v26 = vpack.c.bf16 %v2066_v23, %v2050_v21  ;;  %v2083_v27 = vpack.c.bf16 %v2067_v5, %v2051_v10  ;;  %v4996_v21 = vld [vmem:[%s5625_s16 + $0x250] sm:$0xff]  ;;  %v5002_v10 = vld [vmem:[%s5625_s16 + $0x280] sm:$0xff] }
 0x59e   : > { %v5010_v23 = vld [vmem:[%s5625_s16 + $0x2c0] sm:$0xff] }
 0x59f   : > { %3156 = vmatmul.bf16.vlgmr.msrb.gmra.mxu0 %v2082_v26  ;;  %3170 = vmatmul.bf16.vlgmr.msra.gmra.mxu1 %v2083_v27  ;;  %v1835_v28 = vpop.f32.mrf.mxu2  ;;  %v1849_v29 = vpop.f32.mrf.mxu3  ;;  %v5049_v26 = vld [vmem:[%s5625_s16 + $0x3f8] sm:$0xff]  ;;  %v4987_v27 = vld [vmem:[%s5625_s16 + $0x208] sm:$0xff] }
 0x5a0   : > { %3260 = vmatpush.bf16.msrb.mxu0 %v5009_v24  ;;  %3274 = vmatpush.bf16.msra.mxu1 %v5017_v25  ;;  %v2064_v31 = vmax.f32 %v1835_v28, 0.0  ;;  %v2065_v32 = vmax.f32 %v1849_v29, 0.0  ;;  %v5041_v25 = vld [vmem:[%s5625_s16 + $0x3b8] sm:$0xff]  ;;  %v4995_v28 = vld [vmem:[%s5625_s16 + $0x248] sm:$0xff] }
 0x5a2   : > { %v2080_v35 = vpack.c.bf16 %v2064_v31, %v2048_v30  ;;  %v2081_v36 = vpack.c.bf16 %v2065_v32, %v2049_v12  ;;  %v1917_v37 = vpop.f32.mrf.mxu0  ;;  %v1931_v38 = vpop.f32.mrf.mxu1 }
 0x5a3   : > { %v2054_v55 = vmax.f32 %v1917_v37, 0.0  ;;  %v2055_v56 = vmax.f32 %v1931_v38, 0.0  ;;  %v4986_v38 = vld [vmem:[%s5625_s16 + $0x200] sm:$0xff] }
 0x5a4   : > { %3261 = vmatpush.bf16.msrb.mxu0 %v5008_v33  ;;  %3275 = vmatpush.bf16.msra.mxu1 %v5016_v34  ;;  %v5040_v34 = vld [vmem:[%s5625_s16 + $0x3b0] sm:$0xff] }
 0x5a5   : > { %3128 = vmatmul.bf16.vlgmr.msrb.gmra.mxu2 %v2080_v35  ;;  %3142 = vmatmul.bf16.vlgmr.msra.gmra.mxu3 %v2081_v36  ;;  %v5048_v35 = vld [vmem:[%s5625_s16 + $0x3f0] sm:$0xff] }
 0x5a6   : > { %3232 = vmatpush.bf16.msrb.mxu2 %v4993_v39  ;;  %3246 = vmatpush.bf16.msra.mxu3 %v5001_v40  ;;  %v4994_v39 = vld [vmem:[%s5625_s16 + $0x240] sm:$0xff]  ;;  %v5025_v40 = vld [vmem:[%s5625_s16 + $0x338] sm:$0xff] }
 0x5a7   : > { %v1889_v45 = vpop.f32.mrf.mxu2  ;;  %v1903_v46 = vpop.f32.mrf.mxu3 }
 0x5a8   : > { %3262 = vmatpush.bf16.msrb.mxu0 %v5007_v41  ;;  %3276 = vmatpush.bf16.msra.mxu1 %v5015_v42  ;;  %v2052_v4 = vmax.f32 %v1889_v45, 0.0  ;;  %v2053_v22 = vmax.f32 %v1903_v46, 0.0  ;;  %v5033_v41 = vld [vmem:[%s5625_s16 + $0x378] sm:$0xff] }
 0x5aa   : > { %3233 = vmatpush.bf16.msrb.mxu2 %v4992_v43  ;;  %3247 = vmatpush.bf16.msra.mxu3 %v5000_v44  ;;  %v1919_v51 = vpop.f32.mrf.mxu0  ;;  %v1933_v52 = vpop.f32.mrf.mxu1 }
 0x5ab   : > { %v2070_v57 = vmax.f32 %v1919_v51, 0.0  ;;  %v2071_v58 = vmax.f32 %v1933_v52, 0.0  ;;  %v5047_v51 = vld [vmem:[%s5625_s16 + $0x3e8] sm:$0xff] }
 0x5ac   : > { %3263 = vmatpush.bf16.msrb.mxu0 %v5006_v49  ;;  %3277 = vmatpush.bf16.msra.mxu1 %v5014_v50  ;;  %v5039_v50 = vld [vmem:[%s5625_s16 + $0x3a8] sm:$0xff] }
 0x5ad   : > { %v2086_v61 = vpack.c.bf16 %v2070_v57, %v2054_v55  ;;  %v2087_v62 = vpack.c.bf16 %v2071_v58, %v2055_v56  ;;  %v5032_v55 = vld [vmem:[%s5625_s16 + $0x370] sm:$0xff]  ;;  %v5038_v56 = vld [vmem:[%s5625_s16 + $0x3a0] sm:$0xff]  ;;  %v5023_v58 = vld [vmem:[%s5625_s16 + $0x328] sm:$0xff] }
 0x5ae   : > { %3234 = vmatpush.bf16.msrb.mxu2 %v4991_v53  ;;  %3248 = vmatpush.bf16.msra.mxu3 %v4999_v54  ;;  %v5024_v54 = vld [vmem:[%s5625_s16 + $0x330] sm:$0xff]  ;;  %v5046_v57 = vld [vmem:[%s5625_s16 + $0x3e0] sm:$0xff] }
 0x5af   : > { %3212 = vmatmul.bf16.vlgmr.msra.gmra.mxu0 %v2086_v61  ;;  %3226 = vmatmul.bf16.vlgmr.msrb.gmra.mxu1 %v2087_v62  ;;  %v1891_v0 = vpop.f32.mrf.mxu2  ;;  %v1905_v3 = vpop.f32.mrf.mxu3  ;;  %v5045_v61 = vld [vmem:[%s5625_s16 + $0x3d8] sm:$0xff]  ;;  %v5022_v62 = vld [vmem:[%s5625_s16 + $0x320] sm:$0xff] }
 0x5b0   : > { %3264 = vmatpush.bf16.msrb.mxu0 %v5005_v59  ;;  %3278 = vmatpush.bf16.msra.mxu1 %v5013_v60  ;;  %v2068_v6 = vmax.f32 %v1891_v0, 0.0  ;;  %v2069_v7 = vmax.f32 %v1905_v3, 0.0  ;;  %v5031_v59 = vld [vmem:[%s5625_s16 + $0x368] sm:$0xff]  ;;  %v5037_v60 = vld [vmem:[%s5625_s16 + $0x398] sm:$0xff]  ;;  %v5044_v0 = vld [vmem:[%s5625_s16 + $0x3d0] sm:$0xff] }
 0x5b1   : > { %v5021_v3 = vld [vmem:[%s5625_s16 + $0x318] sm:$0xff] }
 0x5b2   : > { %v2084_v11 = vpack.c.bf16 %v2068_v6, %v2052_v4  ;;  %v2085_v15 = vpack.c.bf16 %v2069_v7, %v2053_v22  ;;  %3235 = vmatpush.bf16.msrb.mxu2 %v4990_v63  ;;  %3249 = vmatpush.bf16.msra.mxu3 %v4998_v19  ;;  %v5030_v63 = vld [vmem:[%s5625_s16 + $0x360] sm:$0xff]  ;;  %v5036_v19 = vld [vmem:[%s5625_s16 + $0x390] sm:$0xff]  ;;  %v5029_v4 = vld [vmem:[%s5625_s16 + $0x358] sm:$0xff] }
 0x5b3   : > { %v5035_v7 = vld [vmem:[%s5625_s16 + $0x388] sm:$0xff] }
 0x5b4   : > { %3265 = vmatpush.bf16.msrb.mxu0 %v5004_v8  ;;  %3279 = vmatpush.bf16.msra.mxu1 %v5012_v9  ;;  %v5043_v8 = vld [vmem:[%s5625_s16 + $0x3c8] sm:$0xff]  ;;  %v5020_v9 = vld [vmem:[%s5625_s16 + $0x310] sm:$0xff] }
 0x5b5   : > { %v1973_v17 = vpop.f32.mrf.mxu0  ;;  %v1987_v18 = vpop.f32.mrf.mxu1  ;;  %3184 = vmatmul.bf16.vlgmr.msra.gmra.mxu2 %v2084_v11  ;;  %3198 = vmatmul.bf16.vlgmr.msrb.gmra.mxu3 %v2085_v15  ;;  %v5028_v11 = vld [vmem:[%s5625_s16 + $0x350] sm:$0xff] }
 0x5b6   : > { %3236 = vmatpush.bf16.msrb.mxu2 %v4989_v47  ;;  %3250 = vmatpush.bf16.msra.mxu3 %v4997_v16  ;;  %v2058_v12 = vmax.f32 %v1973_v17, 0.0  ;;  %v2059_v31 = vmax.f32 %v1987_v18, 0.0  ;;  %v5034_v16 = vld [vmem:[%s5625_s16 + $0x380] sm:$0xff]  ;;  %v5019_v18 = vld [vmem:[%s5625_s16 + $0x308] sm:$0xff] }
 0x5b7   : > { %v5042_v17 = vld [vmem:[%s5625_s16 + $0x3c0] sm:$0xff] }
 0x5b8   : > { %3266 = vmatpush.bf16.msrb.mxu0 %v5003_v48  ;;  %3280 = vmatpush.bf16.msra.mxu1 %v5011_v14  ;;  %v1945_v5 = vpop.f32.mrf.mxu2  ;;  %v1959_v24 = vpop.f32.mrf.mxu3  ;;  %v5027_v48 = vld [vmem:[%s5625_s16 + $0x348] sm:$0xff] }
 0x5b9   : > { %v2056_v44 = vmax.f32 %v1945_v5, 0.0  ;;  %v2057_v45 = vmax.f32 %v1959_v24, 0.0 }
 0x5ba   : > { %3237 = vmatpush.bf16.msrb.mxu2 %v4988_v20  ;;  %3251 = vmatpush.bf16.msra.mxu3 %v4996_v21 }
 0x5bc   : > { %3267 = vmatpush.bf16.msrb.mxu0 %v5002_v10  ;;  %3281 = vmatpush.bf16.msra.mxu1 %v5010_v23 }
 0x5bd   : > { %v1975_v29 = vpop.f32.mrf.mxu0  ;;  %v1989_v30 = vpop.f32.mrf.mxu1 }
 0x5be   : > { %v2074_v32 = vmax.f32 %v1975_v29, 0.0  ;;  %v2075_v33 = vmax.f32 %v1989_v30, 0.0  ;;  %3238 = vmatpush.bf16.msrb.mxu2 %v4987_v27  ;;  %3252 = vmatpush.bf16.msra.mxu3 %v4995_v28  ;;  %v5026_v27 = vld [vmem:[%s5625_s16 + $0x340] sm:$0xff] }
 0x5c0   : > { %3316 = vmatpush.bf16.msra.mxu0 %v5041_v25  ;;  %3330 = vmatpush.bf16.msrb.mxu1 %v5049_v26  ;;  %v2090_v36 = vpack.c.bf16 %v2074_v32, %v2058_v12  ;;  %v2091_v37 = vpack.c.bf16 %v2075_v33, %v2059_v31  ;;  %v1947_v42 = vpop.f32.mrf.mxu2  ;;  %v1961_v43 = vpop.f32.mrf.mxu3  ;;  %v5018_v26 = vld [vmem:[%s5625_s16 + $0x300] sm:$0xff] }
 0x5c1   : > { %v2072_v46 = vmax.f32 %v1947_v42, 0.0  ;;  %v2073_v49 = vmax.f32 %v1961_v43, 0.0 }
 0x5c2   : > { %3268 = vmatmul.bf16.vlgmr.msrb.gmra.mxu0 %v2090_v36  ;;  %3282 = vmatmul.bf16.vlgmr.msra.gmra.mxu1 %v2091_v37 }
 0x5c3   : > { %3239 = vmatpush.bf16.msrb.mxu2 %v4986_v38  ;;  %3253 = vmatpush.bf16.msra.mxu3 %v4994_v39  ;;  %v2088_v52 = vpack.c.bf16 %v2072_v46, %v2056_v44  ;;  %v2089_v53 = vpack.c.bf16 %v2073_v49, %v2057_v45 }
 0x5c4   : > { %3317 = vmatpush.bf16.msra.mxu0 %v5040_v34  ;;  %3331 = vmatpush.bf16.msrb.mxu1 %v5048_v35 }
 0x5c6   : > { %3240 = vmatmul.bf16.vlgmr.msrb.gmra.mxu2 %v2088_v52  ;;  %3254 = vmatmul.bf16.vlgmr.msra.gmra.mxu3 %v2089_v53 }
 0x5c7   : > { %3288 = vmatpush.bf16.msra.mxu2 %v5025_v40  ;;  %3302 = vmatpush.bf16.msrb.mxu3 %v5033_v41 }
 0x5c8   : > { %3318 = vmatpush.bf16.msra.mxu0 %v5039_v50  ;;  %3332 = vmatpush.bf16.msrb.mxu1 %v5047_v51 }
 0x5cb   : > { %3289 = vmatpush.bf16.msra.mxu2 %v5024_v54  ;;  %3303 = vmatpush.bf16.msrb.mxu3 %v5032_v55 }
 0x5cc   : > { %3319 = vmatpush.bf16.msra.mxu0 %v5038_v56  ;;  %3333 = vmatpush.bf16.msrb.mxu1 %v5046_v57 }
 0x5cf   : > { %3290 = vmatpush.bf16.msra.mxu2 %v5023_v58  ;;  %3304 = vmatpush.bf16.msrb.mxu3 %v5031_v59 }
 0x5d0   : > { %3320 = vmatpush.bf16.msra.mxu0 %v5037_v60  ;;  %3334 = vmatpush.bf16.msrb.mxu1 %v5045_v61 }
 0x5d3   : > { %3291 = vmatpush.bf16.msra.mxu2 %v5022_v62  ;;  %3305 = vmatpush.bf16.msrb.mxu3 %v5030_v63  ;;  %v2029_v22 = vpop.f32.mrf.mxu0  ;;  %v2043_v6 = vpop.f32.mrf.mxu1 }
 0x5d4   : > { %3321 = vmatpush.bf16.msra.mxu0 %v5036_v19  ;;  %3335 = vmatpush.bf16.msrb.mxu1 %v5044_v0  ;;  %v2062_v21 = vmax.f32 %v2029_v22, 0.0  ;;  %v2063_v10 = vmax.f32 %v2043_v6, 0.0 }
 0x5d7   : > { %3292 = vmatpush.bf16.msra.mxu2 %v5021_v3  ;;  %3306 = vmatpush.bf16.msrb.mxu3 %v5029_v4 }
 0x5d8   : > { %v2001_v15 = vpop.f32.mrf.mxu2  ;;  %v2015_v47 = vpop.f32.mrf.mxu3  ;;  %3322 = vmatpush.bf16.msra.mxu0 %v5035_v7  ;;  %3336 = vmatpush.bf16.msrb.mxu1 %v5043_v8 }
 0x5d9   : > { %v2060_v30 = vmax.f32 %v2001_v15, 0.0  ;;  %v2061_v12 = vmax.f32 %v2015_v47, 0.0 }
 0x5db   : > { %3293 = vmatpush.bf16.msra.mxu2 %v5020_v9  ;;  %3307 = vmatpush.bf16.msrb.mxu3 %v5028_v11  ;;  %v2031_v14 = vpop.f32.mrf.mxu0  ;;  %v2045_v20 = vpop.f32.mrf.mxu1 }
 0x5dc   : > { %v2078_v23 = vmax.f32 %v2031_v14, 0.0  ;;  %v2079_v5 = vmax.f32 %v2045_v20, 0.0  ;;  %3323 = vmatpush.bf16.msra.mxu0 %v5034_v16  ;;  %3337 = vmatpush.bf16.msrb.mxu1 %v5042_v17 }
 0x5de   : > { %v2094_v24 = vpack.c.bf16 %v2078_v23, %v2062_v21  ;;  %v2095_v25 = vpack.c.bf16 %v2079_v5, %v2063_v10 }
 0x5df   : > { %3294 = vmatpush.bf16.msra.mxu2 %v5019_v18  ;;  %3308 = vmatpush.bf16.msrb.mxu3 %v5027_v48 }
 0x5e0   : > { %3324 = vmatmul.bf16.vlgmr.msra.gmra.mxu0 %v2094_v24  ;;  %3338 = vmatmul.bf16.vlgmr.msrb.gmra.mxu1 %v2095_v25  ;;  %v2003_v28 = vpop.f32.mrf.mxu2  ;;  %v2017_v29 = vpop.f32.mrf.mxu3 }
 0x5e1   : > { %v2076_v31 = vmax.f32 %v2003_v28, 0.0  ;;  %v2077_v32 = vmax.f32 %v2017_v29, 0.0 }
 0x5e3   : > { %3295 = vmatpush.bf16.msra.mxu2 %v5018_v26  ;;  %3309 = vmatpush.bf16.msrb.mxu3 %v5026_v27  ;;  %v2092_v33 = vpack.c.bf16 %v2076_v31, %v2060_v30  ;;  %v2093_v34 = vpack.c.bf16 %v2077_v32, %v2061_v12 }
 0x5e6   : > { %3296 = vmatmul.bf16.vlgmr.msra.gmra.mxu2 %v2092_v33  ;;  %3310 = vmatmul.bf16.vlgmr.msrb.gmra.mxu3 %v2093_v34 }
 0x61c   : > { %v3157_v37 = vpop.f32.mrf.mxu0  ;;  %v3171_v38 = vpop.f32.mrf.mxu1 }
 0x624   : > { %v3159_v41 = vpop.f32.mrf.mxu0  ;;  %v3173_v42 = vpop.f32.mrf.mxu1 }
 0x628   : > { %v3129_v35 = vpop.f32.mrf.mxu2  ;;  %v3143_v36 = vpop.f32.mrf.mxu3 }
 0x629   : > { %v3130_v43 = vadd.f32 %v3129_v35, %v5909_v1 }
 0x62b   : > { %v3144_v46 = vadd.f32 %v3143_v36, %v3130_v43 }
 0x62c   : > { %v3213_v49 = vpop.f32.mrf.mxu0  ;;  %v3227_v50 = vpop.f32.mrf.mxu1 }
 0x62d   : > { %v3158_v51 = vadd.f32 %v3157_v37, %v3144_v46 }
 0x62f   : > { %v3172_v54 = vadd.f32 %v3171_v38, %v3158_v51 }
 0x630   : > { %v3131_v39 = vpop.f32.mrf.mxu2  ;;  %v3145_v40 = vpop.f32.mrf.mxu3 }
 0x631   : > { %v3132_v52 = vadd.f32 %v3131_v39, %v5911_v2 }
 0x633   : > { %v3146_v53 = vadd.f32 %v3145_v40, %v3132_v52 }
 0x634   : > { %v3215_v58 = vpop.f32.mrf.mxu0  ;;  %v3229_v60 = vpop.f32.mrf.mxu1 }
 0x635   : > { %v3160_v59 = vadd.f32 %v3159_v41, %v3146_v53 }
 0x637   : > { %v3174_v62 = vadd.f32 %v3173_v42, %v3160_v59 }
 0x638   : > { %v3185_v44 = vpop.f32.mrf.mxu2  ;;  %v3199_v45 = vpop.f32.mrf.mxu3 }
 0x639   : > { %v3186_v57 = vadd.f32 %v3185_v44, %v3172_v54 }
 0x63b   : > { %v3200_v61 = vadd.f32 %v3199_v45, %v3186_v57 }
 0x63d   : > { %v3214_v63 = vadd.f32 %v3213_v49, %v3200_v61 }
 0x63f   : > { %v3269_v3 = vpop.f32.mrf.mxu0  ;;  %v3228_v22 = vadd.f32 %v3227_v50, %v3214_v63  ;;  %v3283_v6 = vpop.f32.mrf.mxu1 }
 0x640   : > { %v3187_v55 = vpop.f32.mrf.mxu2  ;;  %v3201_v56 = vpop.f32.mrf.mxu3 }
 0x641   : > { %v3188_v1 = vadd.f32 %v3187_v55, %v3174_v62 }
 0x643   : > { %v3202_v4 = vadd.f32 %v3201_v56, %v3188_v1 }
 0x645   : > { %v3216_v2 = vadd.f32 %v3215_v58, %v3202_v4 }
 0x647   : > { %v3230_v15 = vadd.f32 %v3229_v60, %v3216_v2  ;;  %v3271_v47 = vpop.f32.mrf.mxu0  ;;  %v3285_v18 = vpop.f32.mrf.mxu1  ;;  %v5175_v60 = vld [vmem:[%s5635_s12] sm:$0xf] }
 0x648   : > { %v3384_v61 = vperm.slane %v5175_v60, 2  ;;  %v3387_v1 = vperm.slane %v5175_v60, 3 }
 0x649   : > { %v3241_v19 = vpop.f32.mrf.mxu2  ;;  %v3255_v0 = vpop.f32.mrf.mxu3 }
 0x64a   : > { %v3242_v7 = vadd.f32 %v3241_v19, %v3228_v22 }
 0x64c   : > { %v3256_v8 = vadd.f32 %v3255_v0, %v3242_v7 }
 0x64e   : > { %v3270_v16 = vadd.f32 %v3269_v3, %v3256_v8 }
 0x650   : > { %v3284_v14 = vadd.f32 %v3283_v6, %v3270_v16 }
 0x651   : > { %v3243_v9 = vpop.f32.mrf.mxu2  ;;  %v3257_v11 = vpop.f32.mrf.mxu3 }
 0x652   : > { %v3244_v17 = vadd.f32 %v3243_v9, %v3230_v15 }
 0x654   : > { %v3258_v48 = vadd.f32 %v3257_v11, %v3244_v17 }
 0x656   : > { %v3272_v5 = vadd.f32 %v3271_v47, %v3258_v48 }
 0x658   : > { %v3286_v27 = vadd.f32 %v3285_v18, %v3272_v5 }
 0x65d   : > { %v3325_v23 = vpop.f32.mrf.mxu0  ;;  %v3339_v25 = vpop.f32.mrf.mxu1 }
 0x665   : > { %v3327_v32 = vpop.f32.mrf.mxu0  ;;  %v3341_v34 = vpop.f32.mrf.mxu1 }
 0x669   : > { %v3297_v20 = vpop.f32.mrf.mxu2  ;;  %v3311_v21 = vpop.f32.mrf.mxu3 }
 0x66a   : > { %v3298_v10 = vadd.f32 %v3297_v20, %v3284_v14 }
 0x66c   : > { %v3312_v24 = vadd.f32 %v3311_v21, %v3298_v10 }
 0x66e   : > { %v3326_v26 = vadd.f32 %v3325_v23, %v3312_v24 }
 0x670   : > { %v3340_v28 = vadd.f32 %v3339_v25, %v3326_v26 }
 0x671   : > { %v3299_v29 = vpop.f32.mrf.mxu2  ;;  %v3313_v12 = vpop.f32.mrf.mxu3 }
 0x672   : > { %v3300_v30 = vadd.f32 %v3299_v29, %v3286_v27  ;;  %3344 = vadd.xlane.f32.xlu2 %v3340_v28 }
 0x674   : > { %v3314_v31 = vadd.f32 %v3313_v12, %v3300_v30 }
 0x676   : > { %v3328_v33 = vadd.f32 %v3327_v32, %v3314_v31 }
 0x678   : > { %v3342_v35 = vadd.f32 %v3341_v34, %v3328_v33 }
 0x67a   : > { %3346 = vadd.xlane.f32.xlu2 %v3342_v35 }
 0x6e5   : > { %v3345_v36 = vpop.xlane.xlu2 %3344 }
 0x6e6   : > { %v3348_v37 = vmul.f32 %v3345_v36, %v5797_v13 }
 0x6e8   : > { %v3350_v38 = vsub.f32 %v3340_v28, %v3348_v37 }
 0x6ea   : > { %v3352_v39 = vmul.f32 %v3350_v38, %v3350_v38 }
 0x6ec   : > { %3354 = vadd.xlane.f32.xlu2 %v3352_v39 }
 0x6ed   : > { %v3347_v40 = vpop.xlane.xlu2 %3346 }
 0x6ee   : > { %v3349_v41 = vmul.f32 %v3347_v40, %v5797_v13 }
 0x6f0   : > { %v3351_v42 = vsub.f32 %v3342_v35, %v3349_v41 }
 0x6f2   : > { %v3353_v43 = vmul.f32 %v3351_v42, %v3351_v42 }
 0x6f4   : > { %3356 = vadd.xlane.f32.xlu2 %v3353_v43 }
 0x75f   : > { %v3355_v44 = vpop.xlane.xlu2 %3354 }
 0x760   : > { %v3358_v45 = vmul.f32 %v3355_v44, %v5797_v13 }
 0x762   : > { %v3360_v46 = vadd.f32 1e-05, %v3358_v45 }
 0x764   : > { %5171 = vrsqrt.f32 %v3360_v46  ;;  %vm3368_vm12 = vweird.f32 %v3360_v46 }
 0x767   : > { %v3357_v49 = vpop.xlane.xlu2 %3356 }
 0x768   : > { %v3359_v50 = vmul.f32 %v3357_v49, %v5797_v13 }
 0x76a   : > { %v5172_v51 = vpop.eup %5171  ;;  %v3361_v52 = vadd.f32 1e-05, %v3359_v50 }
 0x76b   : > { %v3363_v53 = vmul.f32 %v5172_v51, %v3360_v46  ;;  %vm3369_vm11 = vweird.f32 %v5172_v51 }
 0x76c   : > { %5173 = vrsqrt.f32 %v3361_v52  ;;  %vm3370_vm13 = vmor %vm3368_vm12, %vm3369_vm11  ;;  %vm3378_vm15 = vweird.f32 %v3361_v52 }
 0x76d   : > { %v3364_v54 = vmul.f32 %v5172_v51, %v3363_v53 }
 0x76f   : > { %v3365_v55 = vmul.f32 0.5, %v3364_v54 }
 0x771   : > { %v3366_v56 = vsub.f32 1.5, %v3365_v55 }
 0x772   : > { %v5174_v57 = vpop.eup %5173 }
 0x773   : > { %v3367_v58 = vmul.f32 %v5172_v51, %v3366_v56  ;;  %v3373_v59 = vmul.f32 %v5174_v57, %v3361_v52  ;;  %vm3379_vm14 = vweird.f32 %v5174_v57 }
 0x774   : > { %vm3380_vm0 = vmor %vm3378_vm15, %vm3379_vm14 }
 0x775   : > { %v3371_v62 = vsel %vm3370_vm13, %v5172_v51, %v3367_v58  ;;  %v3374_v63 = vmul.f32 %v5174_v57, %v3373_v59 }
 0x776   : > { %v3382_v19 = vmul.f32 %v3371_v62, %v3350_v38 }
 0x777   : > { %v3375_v13 = vmul.f32 0.5, %v3374_v63 }
 0x778   : > { %v3385_v0 = vmul.f32 %v3384_v61, %v3382_v19 }
 0x779   : > { %v3376_v3 = vsub.f32 1.5, %v3375_v13 }
 0x77a   : > { %v3388_v4 = vadd.f32 %v3387_v1, %v3385_v0 }
 0x77b   : > { %v3377_v22 = vmul.f32 %v5174_v57, %v3376_v3 }
 0x77c   : > { %3390 = vst [vmem:[#allocation2] sm:$0xff] %v3388_v4 }
 0x77d   : > { %v3381_v6 = vsel %vm3380_vm0, %v5174_v57, %v3377_v22 }
 0x77e   : > { %v3383_v7 = vmul.f32 %v3381_v6, %v3351_v42 }
 0x780   : > { %v3386_v2 = vmul.f32 %v3384_v61, %v3383_v7  ;;  %3395 = sbr.rel (%p4752_p0) target bundleno = 1927 (0x787), region = 72 }
 0x782   : > { %v3389_v8 = vadd.f32 %v3387_v1, %v3386_v2 }
 0x784   : > { %3391 = vst [vmem:[#allocation2 + $0x8] sm:$0xff] %v3389_v8 }
 0x785   : > { %3396 = vst [vmem:[#allocation14] sm:$0xff] %v3388_v4 }
 0x786   : > { %3397 = vst [vmem:[#allocation14 + $0x8] sm:$0xff] %v3389_v8 }
 0x787 PF: > { %p5088_p1 = scmp.eq.s32.totalorder %s5525_s27, 1  ;;  %s6243_s19 = sld [smem:[#allocation31_spill]] }
 0x788   : > { %s5458_s3 = smov [#allocation14]   ;;  %s5459_s2 = smov 128  }
 0x789   : > { %s3406_s4 = sshll.u32 %s5458_s3, 4  ;;  %s5460_s6 = smov 8   ;;  %s3407_s4 = int_to_ptr.vmem [resolvable:$true] %s3406_s4 }
 0x78d   : > { %s3408_s30 = sshll.u32 %s6243_s19, 4  ;;  %s3409_s30 = int_to_ptr.hbm [resolvable:$true] %s3408_s30 }
 0x78e   : > { %5067 = dma.vmem_to_hbm [thread:$0]  (%p5088_p1), %s3407_s4, 256, %s3409_s30, [#allocation7], %s5459_s2, %s5459_s2, %s5460_s6  }
 0x78f   : > { %5423 = dma.done.wait (%p5088_p1), [#allocation7], 256  }
 0x790   : > { %5425 = vsyncadd (%p5088_p1), [#allocation7], 4294967040 }
 0x791 PF: > { %s6244_s24 = sld [smem:[#allocation25_spill]]  ;;  %s6248_s21 = smov %s5432_s22 }
 0x792   : > { %s6245_s9 = sld [smem:[#allocation24_spill]] }
 0x793   : > { %s6246_s23 = sld [smem:[#allocation27_spill]] }
 0x794   : > { %s6247_s27 = sld [smem:[#allocation26_spill]] }
 0x797   : > { %s26_s26 = sadd.s32 1, %s6244_s24   ;;  %s6250_s24 = smov %s5444_s25 }
 0x798   : > { %p23_p2 = scmp.ge.s32.totalorder %s26_s26, 4   ;;  %s6249_s22 = smov %s6245_s9 }
 0x79a   : > { %s6251_s25 = smov %s6247_s27  ;;  %25 = sbr.rel (!%p23_p2) target bundleno = 14 (0xe), region = 139 }
 0x79f   :  { %3425 = vsyncpa [#allocation6], 1 }
 0x7a0   :  { %3427 = vsyncpa [#allocation6 + $0x1], 1 }
 0x7a1   :  { %3428 = vsyncpa [#allocation9], 1 }
 0x7a2   :  { %3430 = vsyncpa [#allocation9 + $0x1], 1 }
 0x7a3   :  { %3431 = vsyncpa [#allocation12], 1 }
 0x7a4   :  { %3433 = vsyncpa [#allocation12 + $0x1], 1 }
 0x7a5   :  { %3434 = vsyncpa [#allocation7], 1 }
 0x7a6   :  { %3436 = vsyncpa [#allocation7 + $0x1], 1 }
 0x7a7   :  { %3437 = vsyncmov [#allocation4] }
 0x7aa   :  { %s3438_s10 = vpop.sfrf %3437 }
 0x7ab   :  { %p4757_p3 = scmp.ne.s32.totalorder %s3438_s10, 0 }
 0x7ad   :  { %3442 = shalt.err (%p4757_p3)  }

</bundles_post_ra>
